<compile_context>
chip_gen: v7x
topology: tpu7x:2x2x1
jax: 0.10.0
libtpu: 0.0.40
codegen_flags: <defaults>
</compile_context>

<pallas_src>
import jax
import jax.numpy as jnp
import numpy as np
from jax.experimental import pallas as pl
from jax.experimental.pallas import tpu as pltpu

# conv1: ReplicationPad1d(1) + Conv1d(k=3, dilation=1)
K1 = 3
PAD1 = 1
# residual blocks: ReplicationPad1d(4) + Conv1d(k=5, dilation=2)
KB = 5
DILB = 2
PADB = 4


def _leaky(v):
    # LeakyReLU(negative_slope=0.01); slope < 1 so max(x, 0.01*x) is exact.
    return jnp.maximum(v, 0.01 * v)


def _taps(a, *, Bt, T, pad, K, dil):
    """Replication-padded dilated time taps of a time-major (T*Bt, C) matrix.

    tap_k[t] = a[clamp(t + dil*k - pad, 0, T-1)]; returned as K matrices of
    shape (T*Bt, C) built from boundary-clamped row-block slices (no padded
    intermediate buffer).
    """
    first = a[0:Bt, :]                     # t = 0 rows for all batch elems
    last = a[(T - 1) * Bt:T * Bt, :]       # t = T-1 rows for all batch elems
    taps = []
    for k in range(K):
        o = dil * k - pad                  # time offset of this tap
        if o < 0:
            taps.append(jnp.concatenate([first] * (-o) + [a[0:(T + o) * Bt, :]], axis=0))
        elif o == 0:
            taps.append(a)
        else:
            taps.append(jnp.concatenate([a[o * Bt:T * Bt, :]] + [last] * o, axis=0))
    return taps


def _conv_bn_relu(a, w_flat, shift, *, Bt, T, pad, K, dil):
    """Replication-padded dilated Conv1d + folded-BN shift + ReLU.

    a:      (T*Bt, C) time-major activation (row = t*Bt + b).
    w_flat: (K*C, F)  flattened weight, row index = k*C + c_in (BN scale folded).
    shift:  (1, F)    folded BN shift (beta - mean*scale).
    Returns (T*Bt, F).
    """
    # im2col: K dilated time-shifts laid out along lanes -> one MXU matmul.
    cols = jnp.concatenate(_taps(a, Bt=Bt, T=T, pad=pad, K=K, dil=dil), axis=1)
    y = jnp.dot(cols, w_flat, preferred_element_type=jnp.float32)
    return jnp.maximum(y + shift, 0.0)


def transcan_kernel(x_ref, p3d_ref,
                    w1_ref, b1_ref, wb_ref, bb_ref, wr_ref, br_ref,
                    we_ref, be_ref, w2d_ref, w3d_ref, bo1_ref,
                    wo2_ref, bo2_ref, wo3_ref, bo3_ref, o_ref):
    T, Bt, C_in = x_ref.shape
    F = w1_ref.shape[1]
    NB = wb_ref.shape[0]

    # (T, Bt, C) -> (T*Bt, C) is a pure leading-dim merge (layout no-op when
    # Bt is a sublane multiple).
    x = x_ref[...].reshape(T * Bt, C_in)

    # conv1: pad(1) + Conv1d(C_in -> F, k=3, no bias) + BN(fold) + ReLU (+Dropout=id)
    y = _conv_bn_relu(x, w1_ref[...], b1_ref[...], Bt=Bt, T=T, pad=PAD1, K=K1, dil=1)

    # residual blocks: pad(4) + Conv1d(F->F, k=5, dil=2, no bias) + BN + ReLU + skip
    for i in range(NB):
        z = _conv_bn_relu(y, wb_ref[i], bb_ref[i], Bt=Bt, T=T, pad=PADB, K=KB, dil=DILB)
        y = y + z

    # reduce: Conv1d(F -> F, kernel_size=T, bias) collapses time to 1.
    # Build (Bt, T*F) by lane-concatenating the per-t row blocks (t-major),
    # matching the host-side t-major flatten of the weight -> ONE matmul.
    ycat = jnp.concatenate([y[t * Bt:(t + 1) * Bt, :] for t in range(T)], axis=1)
    r = jnp.dot(ycat, wr_ref[...], preferred_element_type=jnp.float32) + br_ref[...]
    x2d = jnp.maximum(r, 0.0)                                    # (Bt, F)

    # 3-D keypoint branch: embedding_3d_1 + LeakyReLU
    x3d = _leaky(jnp.dot(p3d_ref[...], we_ref[...],
                         preferred_element_type=jnp.float32) + be_ref[...])  # (Bt, E)

    # out1 on cat([x_2d, x_3d]) via split weights, then out2 (+LeakyReLU), out3.
    h = _leaky(jnp.dot(x2d, w2d_ref[...], preferred_element_type=jnp.float32)
               + jnp.dot(x3d, w3d_ref[...], preferred_element_type=jnp.float32)
               + bo1_ref[...])
    h = _leaky(jnp.dot(h, wo2_ref[...], preferred_element_type=jnp.float32) + bo2_ref[...])
    o_ref[...] = jnp.dot(h, wo3_ref[...], preferred_element_type=jnp.float32) + bo3_ref[...]


def transcan3dkeys2(p2ds, p3d, kparams, *, block_batch=8):
    """p2ds: (B, T, C_in), p3d: (B, 3*16) -> (B, out_channels)."""
    (w1f, b1, wbf, bb, wrf, br, we, be, w2d, w3d, bo1, wo2, bo2, wo3, bo3) = kparams
    B, T, C_in = p2ds.shape
    P = p3d.shape[1]
    C_out = wo3.shape[1]

    Bt = block_batch if (B % block_batch == 0) else B
    # (8,128)-tiling rule: second-minor block dim must be a multiple of 8 or the full dim.
    assert Bt % 8 == 0 or Bt == B, "block_batch must be a multiple of 8 or equal to B"

    # Present the input time-major so the kernel's 2-D (T*Bt, C) layout is a
    # trivial leading-dim merge of the block (no in-kernel relayout).
    x_t = jnp.transpose(p2ds, (1, 0, 2))   # (T, B, C_in)

    def full(a):
        return pl.BlockSpec(a.shape, lambda b, _n=a.ndim: (0,) * _n)

    out = pl.pallas_call(
        transcan_kernel,
        out_shape=jax.ShapeDtypeStruct((B, C_out), jnp.float32),
        grid=(B // Bt,),
        in_specs=[
            pl.BlockSpec((T, Bt, C_in), lambda b: (0, b, 0)),
            pl.BlockSpec((Bt, P), lambda b: (b, 0)),
            full(w1f), full(b1), full(wbf), full(bb), full(wrf), full(br),
            full(we), full(be), full(w2d), full(w3d), full(bo1),
            full(wo2), full(bo2), full(wo3), full(bo3),
        ],
        out_specs=pl.BlockSpec((Bt, C_out), lambda b: (b, 0)),
        compiler_params=pltpu.CompilerParams(
            dimension_semantics=("parallel",)),
    )(x_t, p3d, w1f, b1, wbf, bb, wrf, br, we, be, w2d, w3d, bo1, wo2, bo2, wo3, bo3)
    return out


# ----------------------------------------------------------------------------
# Parameters: raw (torch-like, for the pure-JAX reference) + kernel-ready prep.
# ----------------------------------------------------------------------------

def init_raw_params(key, C_in, F, C_out, T, NB, P, E):
    ks = jax.random.split(key, 20)

    def n(i, shape, s=0.1):
        return s * jax.random.normal(ks[i], shape, jnp.float32)

    return dict(
        # Conv1d(C_in -> F, k=3, no bias), stored (k, c_in, f_out)
        w1=n(0, (K1, C_in, F), 0.1),
        bn1_gamma=1.0 + n(1, (F,)), bn1_beta=n(2, (F,)),
        bn1_mean=n(3, (F,)), bn1_var=0.5 + jax.random.uniform(ks[4], (F,), jnp.float32),
        # residual-block convs Conv1d(F -> F, k=5, dil=2, no bias), (blk, k, f_in, f_out)
        wb=n(5, (NB, KB, F, F), 0.05),
        bnb_gamma=1.0 + n(6, (NB, F)), bnb_beta=n(7, (NB, F)),
        bnb_mean=n(8, (NB, F)), bnb_var=0.5 + jax.random.uniform(ks[9], (NB, F), jnp.float32),
        # reduce Conv1d(F -> F, kernel_size=T, bias), stored (t, f_in, f_out)
        wr=n(10, (T, F, F), 0.05), br=n(11, (F,), 0.05),
        # embedding_3d_1: Linear(P -> E)
        we=n(12, (P, E), 0.1), be=n(13, (E,), 0.05),
        # out1: Linear(F+E -> F), out2: Linear(F -> F), out3: Linear(F -> C_out)
        w_o1=n(14, (F + E, F), 0.1), b_o1=n(15, (F,), 0.05),
        wo2=n(16, (F, F), 0.1), bo2=n(17, (F,), 0.05),
        wo3=n(18, (F, C_out), 0.1), bo3=n(19, (C_out,), 0.05),
    )


def prepare_kernel_params(raw, eps=1e-5):
    """Fold BN (inference) into conv weights, flatten im2col/reduce weights, split out1."""
    F = raw['w1'].shape[2]
    NB = raw['wb'].shape[0]

    s1 = raw['bn1_gamma'] / jnp.sqrt(raw['bn1_var'] + eps)
    w1f = (raw['w1'] * s1[None, None, :]).reshape(-1, F)            # (K1*C_in, F), row = k*C_in + c
    b1 = (raw['bn1_beta'] - raw['bn1_mean'] * s1).reshape(1, F)

    sb = raw['bnb_gamma'] / jnp.sqrt(raw['bnb_var'] + eps)           # (NB, F)
    wbf = (raw['wb'] * sb[:, None, None, :]).reshape(NB, KB * F, F)  # row = k*F + f_in
    bb = (raw['bnb_beta'] - raw['bnb_mean'] * sb)[:, None, :]        # (NB, 1, F)

    wrf = raw['wr'].reshape(-1, F)                                   # (T*F, F), row = t*F + f_in
    br = raw['br'].reshape(1, F)

    be = raw['be'].reshape(1, -1)
    w2d = raw['w_o1'][:F, :]                                         # multiplies x_2d
    w3d = raw['w_o1'][F:, :]                                         # multiplies x_3d
    bo1 = raw['b_o1'].reshape(1, F)
    bo2 = raw['bo2'].reshape(1, F)
    bo3 = raw['bo3'].reshape(1, -1)
    return (w1f, b1, wbf, bb, wrf, br, raw['we'], be, w2d, w3d, bo1,
            raw['wo2'], bo2, raw['wo3'], bo3)


# ----------------------------------------------------------------------------
# Pure-JAX reference (eval-mode semantics of the PyTorch module).
# ----------------------------------------------------------------------------

def reference_forward(p2ds, p3d, raw, eps=1e-5):
    hp = jax.lax.Precision.HIGHEST
    B, T, C = p2ds.shape
    NB = raw['wb'].shape[0]

    def bn(v, g, b, m, var):
        return (v - m) / jnp.sqrt(var + eps) * g + b

    def rep_pad(v, p):
        return jnp.concatenate(
            [jnp.repeat(v[:, :1], p, axis=1), v, jnp.repeat(v[:, -1:], p, axis=1)], axis=1)

    def leaky(v):
        return jnp.where(v > 0, v, 0.01 * v)

    xp = rep_pad(p2ds, PAD1)
    y = sum(jnp.einsum('btc,cf->btf', xp[:, k:k + T], raw['w1'][k], precision=hp)
            for k in range(K1))
    y = jax.nn.relu(bn(y, raw['bn1_gamma'], raw['bn1_beta'], raw['bn1_mean'], raw['bn1_var']))

    for i in range(NB):
        pre = y
        yp = rep_pad(y, PADB)
        z = sum(jnp.einsum('btf,fg->btg', yp[:, DILB * j:DILB * j + T], raw['wb'][i, j],
                           precision=hp) for j in range(KB))
        z = jax.nn.relu(bn(z, raw['bnb_gamma'][i], raw['bnb_beta'][i],
                           raw['bnb_mean'][i], raw['bnb_var'][i]))
        y = pre + z

    r = raw['br'] + sum(jnp.einsum('bf,fg->bg', y[:, t], raw['wr'][t], precision=hp)
                        for t in range(T))
    x2d = jax.nn.relu(r)                                           # (B, F) since T == time_window
    x3d = leaky(jnp.dot(p3d, raw['we'], precision=hp) + raw['be'])
    h = leaky(jnp.dot(jnp.concatenate([x2d, x3d], axis=1), raw['w_o1'], precision=hp)
              + raw['b_o1'])
    h = leaky(jnp.dot(h, raw['wo2'], precision=hp) + raw['bo2'])
    return jnp.dot(h, raw['wo3'], precision=hp) + raw['bo3']


if __name__ == "__main__":
    # Small-shape instantiation of TransCan3Dkeys2(in_channels=8, num_features=32,
    # out_channels=8, time_window=8, num_blocks=2); p3d keeps the module's 3*16=48
    # input width, embedding width scaled 500 -> 64 for the demo.
    B, T, C_in, F, C_out, NB = 16, 8, 8, 32, 8, 2
    P3D_DIM, EMB = 48, 64

    key = jax.random.PRNGKey(0)
    k1, k2, kp = jax.random.split(key, 3)
    p2ds = jax.random.normal(k1, (B, T, C_in), jnp.float32)
    p3d = jax.random.normal(k2, (B, P3D_DIM), jnp.float32)

    raw = init_raw_params(kp, C_in, F, C_out, T, NB, P3D_DIM, EMB)
    kparams = prepare_kernel_params(raw)

    out = jax.block_until_ready(transcan3dkeys2(p2ds, p3d, kparams, block_batch=8))
    ref = jax.block_until_ready(reference_forward(p2ds, p3d, raw))

    assert out.shape == (B, C_out)
    np.testing.assert_allclose(np.asarray(out), np.asarray(ref), rtol=1e-4, atol=1e-4)
    print("KERNEL_OK")
</pallas_src>

<mosaic_0001>
module attributes {stable_mosaic.version = 11 : i64} {
  func.func @transcan_kernel(%arg0: i32, %arg1: memref<8x8x8xf32, #tpu.memory_space<vmem>>, %arg2: memref<8x48xf32, #tpu.memory_space<vmem>>, %arg3: memref<24x32xf32, #tpu.memory_space<vmem>>, %arg4: memref<1x32xf32, #tpu.memory_space<vmem>>, %arg5: memref<2x160x32xf32, #tpu.memory_space<vmem>>, %arg6: memref<2x1x32xf32, #tpu.memory_space<vmem>>, %arg7: memref<256x32xf32, #tpu.memory_space<vmem>>, %arg8: memref<1x32xf32, #tpu.memory_space<vmem>>, %arg9: memref<48x64xf32, #tpu.memory_space<vmem>>, %arg10: memref<1x64xf32, #tpu.memory_space<vmem>>, %arg11: memref<32x32xf32, #tpu.memory_space<vmem>>, %arg12: memref<64x32xf32, #tpu.memory_space<vmem>>, %arg13: memref<1x32xf32, #tpu.memory_space<vmem>>, %arg14: memref<32x32xf32, #tpu.memory_space<vmem>>, %arg15: memref<1x32xf32, #tpu.memory_space<vmem>>, %arg16: memref<32x8xf32, #tpu.memory_space<vmem>>, %arg17: memref<1x8xf32, #tpu.memory_space<vmem>>, %arg18: memref<8x8xf32, #tpu.memory_space<vmem>>) attributes {dimension_semantics = [#tpu.dimension_semantics<parallel>], iteration_bounds = array<i64: 2>, scalar_prefetch = 0 : i64, scratch_operands = 0 : i64, tpu.core_type = #tpu.core_type<tc>, window_params = [{transform_indices = @transform_0, window_bounds = array<i64: 8, 8, 8>}, {transform_indices = @transform_1, window_bounds = array<i64: 8, 48>}, {pipeline_mode = #tpu.pipeline_mode<synchronous>, transform_indices = @transform_2, window_bounds = array<i64: 24, 32>}, {pipeline_mode = #tpu.pipeline_mode<synchronous>, transform_indices = @transform_3, window_bounds = array<i64: 1, 32>}, {pipeline_mode = #tpu.pipeline_mode<synchronous>, transform_indices = @transform_4, window_bounds = array<i64: 2, 160, 32>}, {pipeline_mode = #tpu.pipeline_mode<synchronous>, transform_indices = @transform_5, window_bounds = array<i64: 2, 1, 32>}, {pipeline_mode = #tpu.pipeline_mode<synchronous>, transform_indices = @transform_6, window_bounds = array<i64: 256, 32>}, {pipeline_mode = #tpu.pipeline_mode<synchronous>, transform_indices = @transform_7, window_bounds = array<i64: 1, 32>}, {pipeline_mode = #tpu.pipeline_mode<synchronous>, transform_indices = @transform_8, window_bounds = array<i64: 48, 64>}, {pipeline_mode = #tpu.pipeline_mode<synchronous>, transform_indices = @transform_9, window_bounds = array<i64: 1, 64>}, {pipeline_mode = #tpu.pipeline_mode<synchronous>, transform_indices = @transform_10, window_bounds = array<i64: 32, 32>}, {pipeline_mode = #tpu.pipeline_mode<synchronous>, transform_indices = @transform_11, window_bounds = array<i64: 64, 32>}, {pipeline_mode = #tpu.pipeline_mode<synchronous>, transform_indices = @transform_12, window_bounds = array<i64: 1, 32>}, {pipeline_mode = #tpu.pipeline_mode<synchronous>, transform_indices = @transform_13, window_bounds = array<i64: 32, 32>}, {pipeline_mode = #tpu.pipeline_mode<synchronous>, transform_indices = @transform_14, window_bounds = array<i64: 1, 32>}, {pipeline_mode = #tpu.pipeline_mode<synchronous>, transform_indices = @transform_15, window_bounds = array<i64: 32, 8>}, {pipeline_mode = #tpu.pipeline_mode<synchronous>, transform_indices = @transform_16, window_bounds = array<i64: 1, 8>}, {transform_indices = @transform_17, window_bounds = array<i64: 8, 8>}]} {
    %c0 = arith.constant 0 : index
    %c0_0 = arith.constant 0 : index
    %c0_1 = arith.constant 0 : index
    %0 = vector.load %arg1[%c0, %c0_0, %c0_1] : memref<8x8x8xf32, #tpu.memory_space<vmem>>, vector<8x8x8xf32>
    %1 = vector.shape_cast %0 : vector<8x8x8xf32> to vector<64x8xf32>
    %c0_2 = arith.constant 0 : index
    %c0_3 = arith.constant 0 : index
    %2 = vector.load %arg3[%c0_2, %c0_3] : memref<24x32xf32, #tpu.memory_space<vmem>>, vector<24x32xf32>
    %c0_4 = arith.constant 0 : index
    %c0_5 = arith.constant 0 : index
    %3 = vector.load %arg4[%c0_4, %c0_5] : memref<1x32xf32, #tpu.memory_space<vmem>>, vector<1x32xf32>
    %4 = vector.extract_strided_slice %1 {offsets = [0, 0], sizes = [8, 8], strides = [1, 1]} : vector<64x8xf32> to vector<8x8xf32>
    %5 = vector.extract_strided_slice %1 {offsets = [56, 0], sizes = [8, 8], strides = [1, 1]} : vector<64x8xf32> to vector<8x8xf32>
    %6 = vector.extract_strided_slice %1 {offsets = [0, 0], sizes = [56, 8], strides = [1, 1]} : vector<64x8xf32> to vector<56x8xf32>
    %7 = tpu.concatenate %4, %6 in 0 : vector<8x8xf32>, vector<56x8xf32> -> vector<64x8xf32>
    %8 = vector.extract_strided_slice %1 {offsets = [8, 0], sizes = [56, 8], strides = [1, 1]} : vector<64x8xf32> to vector<56x8xf32>
    %9 = tpu.concatenate %8, %5 in 0 : vector<56x8xf32>, vector<8x8xf32> -> vector<64x8xf32>
    %10 = tpu.concatenate %7, %1, %9 in 1 : vector<64x8xf32>, vector<64x8xf32>, vector<64x8xf32> -> vector<64x24xf32>
    %cst = arith.constant dense<0.000000e+00> : vector<64x32xf32>
    %11 = tpu.matmul %10, %2, %cst {dimension_numbers = #tpu.dot_dimension_numbers<[1], [0], [0], [1], [0, 0, 1, 1], [], []>} : vector<64x24xf32>, vector<24x32xf32>, vector<64x32xf32> -> vector<64x32xf32>
    %12 = vector.broadcast %3 : vector<1x32xf32> to vector<64x32xf32>
    %13 = arith.addf %11, %12 : vector<64x32xf32>
    %cst_6 = arith.constant 0.000000e+00 : f32
    %14 = vector.broadcast %cst_6 : f32 to vector<64x32xf32>
    %15 = arith.maximumf %13, %14 : vector<64x32xf32>
    %c0_7 = arith.constant 0 : index
    %c0_8 = arith.constant 0 : index
    %c0_9 = arith.constant 0 : index
    %16 = vector.load %arg5[%c0_7, %c0_8, %c0_9] : memref<2x160x32xf32, #tpu.memory_space<vmem>>, vector<1x160x32xf32>
    %17 = vector.shape_cast %16 : vector<1x160x32xf32> to vector<160x32xf32>
    %c0_10 = arith.constant 0 : index
    %c0_11 = arith.constant 0 : index
    %c0_12 = arith.constant 0 : index
    %18 = vector.load %arg6[%c0_10, %c0_11, %c0_12] : memref<2x1x32xf32, #tpu.memory_space<vmem>>, vector<1x1x32xf32>
    %19 = vector.shape_cast %18 : vector<1x1x32xf32> to vector<1x32xf32>
    %20 = vector.extract_strided_slice %15 {offsets = [0, 0], sizes = [8, 32], strides = [1, 1]} : vector<64x32xf32> to vector<8x32xf32>
    %21 = vector.extract_strided_slice %15 {offsets = [56, 0], sizes = [8, 32], strides = [1, 1]} : vector<64x32xf32> to vector<8x32xf32>
    %22 = vector.extract_strided_slice %15 {offsets = [0, 0], sizes = [32, 32], strides = [1, 1]} : vector<64x32xf32> to vector<32x32xf32>
    %23 = tpu.concatenate %20, %20, %20, %20, %22 in 0 : vector<8x32xf32>, vector<8x32xf32>, vector<8x32xf32>, vector<8x32xf32>, vector<32x32xf32> -> vector<64x32xf32>
    %24 = vector.extract_strided_slice %15 {offsets = [0, 0], sizes = [48, 32], strides = [1, 1]} : vector<64x32xf32> to vector<48x32xf32>
    %25 = tpu.concatenate %20, %20, %24 in 0 : vector<8x32xf32>, vector<8x32xf32>, vector<48x32xf32> -> vector<64x32xf32>
    %26 = vector.extract_strided_slice %15 {offsets = [16, 0], sizes = [48, 32], strides = [1, 1]} : vector<64x32xf32> to vector<48x32xf32>
    %27 = tpu.concatenate %26, %21, %21 in 0 : vector<48x32xf32>, vector<8x32xf32>, vector<8x32xf32> -> vector<64x32xf32>
    %28 = vector.extract_strided_slice %15 {offsets = [32, 0], sizes = [32, 32], strides = [1, 1]} : vector<64x32xf32> to vector<32x32xf32>
    %29 = tpu.concatenate %28, %21, %21, %21, %21 in 0 : vector<32x32xf32>, vector<8x32xf32>, vector<8x32xf32>, vector<8x32xf32>, vector<8x32xf32> -> vector<64x32xf32>
    %30 = tpu.concatenate %23, %25, %15, %27, %29 in 1 : vector<64x32xf32>, vector<64x32xf32>, vector<64x32xf32>, vector<64x32xf32>, vector<64x32xf32> -> vector<64x160xf32>
    %cst_13 = arith.constant dense<0.000000e+00> : vector<64x32xf32>
    %31 = tpu.matmul %30, %17, %cst_13 {dimension_numbers = #tpu.dot_dimension_numbers<[1], [0], [0], [1], [0, 0, 1, 1], [], []>} : vector<64x160xf32>, vector<160x32xf32>, vector<64x32xf32> -> vector<64x32xf32>
    %32 = vector.broadcast %19 : vector<1x32xf32> to vector<64x32xf32>
    %33 = arith.addf %31, %32 : vector<64x32xf32>
    %cst_14 = arith.constant 0.000000e+00 : f32
    %34 = vector.broadcast %cst_14 : f32 to vector<64x32xf32>
    %35 = arith.maximumf %33, %34 : vector<64x32xf32>
    %36 = arith.addf %15, %35 : vector<64x32xf32>
    %c1 = arith.constant 1 : index
    %c0_15 = arith.constant 0 : index
    %c0_16 = arith.constant 0 : index
    %37 = vector.load %arg5[%c1, %c0_15, %c0_16] : memref<2x160x32xf32, #tpu.memory_space<vmem>>, vector<1x160x32xf32>
    %38 = vector.shape_cast %37 : vector<1x160x32xf32> to vector<160x32xf32>
    %c1_17 = arith.constant 1 : index
    %c0_18 = arith.constant 0 : index
    %c0_19 = arith.constant 0 : index
    %39 = vector.load %arg6[%c1_17, %c0_18, %c0_19] : memref<2x1x32xf32, #tpu.memory_space<vmem>>, vector<1x1x32xf32>
    %40 = vector.shape_cast %39 : vector<1x1x32xf32> to vector<1x32xf32>
    %41 = vector.extract_strided_slice %36 {offsets = [0, 0], sizes = [8, 32], strides = [1, 1]} : vector<64x32xf32> to vector<8x32xf32>
    %42 = vector.extract_strided_slice %36 {offsets = [56, 0], sizes = [8, 32], strides = [1, 1]} : vector<64x32xf32> to vector<8x32xf32>
    %43 = vector.extract_strided_slice %36 {offsets = [0, 0], sizes = [32, 32], strides = [1, 1]} : vector<64x32xf32> to vector<32x32xf32>
    %44 = tpu.concatenate %41, %41, %41, %41, %43 in 0 : vector<8x32xf32>, vector<8x32xf32>, vector<8x32xf32>, vector<8x32xf32>, vector<32x32xf32> -> vector<64x32xf32>
    %45 = vector.extract_strided_slice %36 {offsets = [0, 0], sizes = [48, 32], strides = [1, 1]} : vector<64x32xf32> to vector<48x32xf32>
    %46 = tpu.concatenate %41, %41, %45 in 0 : vector<8x32xf32>, vector<8x32xf32>, vector<48x32xf32> -> vector<64x32xf32>
    %47 = vector.extract_strided_slice %36 {offsets = [16, 0], sizes = [48, 32], strides = [1, 1]} : vector<64x32xf32> to vector<48x32xf32>
    %48 = tpu.concatenate %47, %42, %42 in 0 : vector<48x32xf32>, vector<8x32xf32>, vector<8x32xf32> -> vector<64x32xf32>
    %49 = vector.extract_strided_slice %36 {offsets = [32, 0], sizes = [32, 32], strides = [1, 1]} : vector<64x32xf32> to vector<32x32xf32>
    %50 = tpu.concatenate %49, %42, %42, %42, %42 in 0 : vector<32x32xf32>, vector<8x32xf32>, vector<8x32xf32>, vector<8x32xf32>, vector<8x32xf32> -> vector<64x32xf32>
    %51 = tpu.concatenate %44, %46, %36, %48, %50 in 1 : vector<64x32xf32>, vector<64x32xf32>, vector<64x32xf32>, vector<64x32xf32>, vector<64x32xf32> -> vector<64x160xf32>
    %cst_20 = arith.constant dense<0.000000e+00> : vector<64x32xf32>
    %52 = tpu.matmul %51, %38, %cst_20 {dimension_numbers = #tpu.dot_dimension_numbers<[1], [0], [0], [1], [0, 0, 1, 1], [], []>} : vector<64x160xf32>, vector<160x32xf32>, vector<64x32xf32> -> vector<64x32xf32>
    %53 = vector.broadcast %40 : vector<1x32xf32> to vector<64x32xf32>
    %54 = arith.addf %52, %53 : vector<64x32xf32>
    %cst_21 = arith.constant 0.000000e+00 : f32
    %55 = vector.broadcast %cst_21 : f32 to vector<64x32xf32>
    %56 = arith.maximumf %54, %55 : vector<64x32xf32>
    %57 = arith.addf %36, %56 : vector<64x32xf32>
    %58 = vector.extract_strided_slice %57 {offsets = [0, 0], sizes = [8, 32], strides = [1, 1]} : vector<64x32xf32> to vector<8x32xf32>
    %59 = vector.extract_strided_slice %57 {offsets = [8, 0], sizes = [8, 32], strides = [1, 1]} : vector<64x32xf32> to vector<8x32xf32>
    %60 = vector.extract_strided_slice %57 {offsets = [16, 0], sizes = [8, 32], strides = [1, 1]} : vector<64x32xf32> to vector<8x32xf32>
    %61 = vector.extract_strided_slice %57 {offsets = [24, 0], sizes = [8, 32], strides = [1, 1]} : vector<64x32xf32> to vector<8x32xf32>
    %62 = vector.extract_strided_slice %57 {offsets = [32, 0], sizes = [8, 32], strides = [1, 1]} : vector<64x32xf32> to vector<8x32xf32>
    %63 = vector.extract_strided_slice %57 {offsets = [40, 0], sizes = [8, 32], strides = [1, 1]} : vector<64x32xf32> to vector<8x32xf32>
    %64 = vector.extract_strided_slice %57 {offsets = [48, 0], sizes = [8, 32], strides = [1, 1]} : vector<64x32xf32> to vector<8x32xf32>
    %65 = vector.extract_strided_slice %57 {offsets = [56, 0], sizes = [8, 32], strides = [1, 1]} : vector<64x32xf32> to vector<8x32xf32>
    %66 = tpu.concatenate %58, %59, %60, %61, %62, %63, %64, %65 in 1 : vector<8x32xf32>, vector<8x32xf32>, vector<8x32xf32>, vector<8x32xf32>, vector<8x32xf32>, vector<8x32xf32>, vector<8x32xf32>, vector<8x32xf32> -> vector<8x256xf32>
    %c0_22 = arith.constant 0 : index
    %c0_23 = arith.constant 0 : index
    %67 = vector.load %arg7[%c0_22, %c0_23] : memref<256x32xf32, #tpu.memory_space<vmem>>, vector<256x32xf32>
    %cst_24 = arith.constant dense<0.000000e+00> : vector<8x32xf32>
    %68 = tpu.matmul %66, %67, %cst_24 {dimension_numbers = #tpu.dot_dimension_numbers<[1], [0], [0], [1], [0, 0, 1, 1], [], []>} : vector<8x256xf32>, vector<256x32xf32>, vector<8x32xf32> -> vector<8x32xf32>
    %c0_25 = arith.constant 0 : index
    %c0_26 = arith.constant 0 : index
    %69 = vector.load %arg8[%c0_25, %c0_26] : memref<1x32xf32, #tpu.memory_space<vmem>>, vector<1x32xf32>
    %70 = vector.broadcast %69 : vector<1x32xf32> to vector<8x32xf32>
    %71 = arith.addf %68, %70 : vector<8x32xf32>
    %cst_27 = arith.constant 0.000000e+00 : f32
    %72 = vector.broadcast %cst_27 : f32 to vector<8x32xf32>
    %73 = arith.maximumf %71, %72 : vector<8x32xf32>
    %c0_28 = arith.constant 0 : index
    %c0_29 = arith.constant 0 : index
    %74 = vector.load %arg2[%c0_28, %c0_29] : memref<8x48xf32, #tpu.memory_space<vmem>>, vector<8x48xf32>
    %c0_30 = arith.constant 0 : index
    %c0_31 = arith.constant 0 : index
    %75 = vector.load %arg9[%c0_30, %c0_31] : memref<48x64xf32, #tpu.memory_space<vmem>>, vector<48x64xf32>
    %cst_32 = arith.constant dense<0.000000e+00> : vector<8x64xf32>
    %76 = tpu.matmul %74, %75, %cst_32 {dimension_numbers = #tpu.dot_dimension_numbers<[1], [0], [0], [1], [0, 0, 1, 1], [], []>} : vector<8x48xf32>, vector<48x64xf32>, vector<8x64xf32> -> vector<8x64xf32>
    %c0_33 = arith.constant 0 : index
    %c0_34 = arith.constant 0 : index
    %77 = vector.load %arg10[%c0_33, %c0_34] : memref<1x64xf32, #tpu.memory_space<vmem>>, vector<1x64xf32>
    %78 = vector.broadcast %77 : vector<1x64xf32> to vector<8x64xf32>
    %79 = arith.addf %76, %78 : vector<8x64xf32>
    %cst_35 = arith.constant 0.00999999977 : f32
    %80 = vector.broadcast %cst_35 : f32 to vector<8x64xf32>
    %81 = arith.mulf %80, %79 : vector<8x64xf32>
    %82 = arith.maximumf %79, %81 : vector<8x64xf32>
    %c0_36 = arith.constant 0 : index
    %c0_37 = arith.constant 0 : index
    %83 = vector.load %arg11[%c0_36, %c0_37] : memref<32x32xf32, #tpu.memory_space<vmem>>, vector<32x32xf32>
    %cst_38 = arith.constant dense<0.000000e+00> : vector<8x32xf32>
    %84 = tpu.matmul %73, %83, %cst_38 {dimension_numbers = #tpu.dot_dimension_numbers<[1], [0], [0], [1], [0, 0, 1, 1], [], []>} : vector<8x32xf32>, vector<32x32xf32>, vector<8x32xf32> -> vector<8x32xf32>
    %c0_39 = arith.constant 0 : index
    %c0_40 = arith.constant 0 : index
    %85 = vector.load %arg12[%c0_39, %c0_40] : memref<64x32xf32, #tpu.memory_space<vmem>>, vector<64x32xf32>
    %cst_41 = arith.constant dense<0.000000e+00> : vector<8x32xf32>
    %86 = tpu.matmul %82, %85, %cst_41 {dimension_numbers = #tpu.dot_dimension_numbers<[1], [0], [0], [1], [0, 0, 1, 1], [], []>} : vector<8x64xf32>, vector<64x32xf32>, vector<8x32xf32> -> vector<8x32xf32>
    %87 = arith.addf %84, %86 : vector<8x32xf32>
    %c0_42 = arith.constant 0 : index
    %c0_43 = arith.constant 0 : index
    %88 = vector.load %arg13[%c0_42, %c0_43] : memref<1x32xf32, #tpu.memory_space<vmem>>, vector<1x32xf32>
    %89 = vector.broadcast %88 : vector<1x32xf32> to vector<8x32xf32>
    %90 = arith.addf %87, %89 : vector<8x32xf32>
    %cst_44 = arith.constant 0.00999999977 : f32
    %91 = vector.broadcast %cst_44 : f32 to vector<8x32xf32>
    %92 = arith.mulf %91, %90 : vector<8x32xf32>
    %93 = arith.maximumf %90, %92 : vector<8x32xf32>
    %c0_45 = arith.constant 0 : index
    %c0_46 = arith.constant 0 : index
    %94 = vector.load %arg14[%c0_45, %c0_46] : memref<32x32xf32, #tpu.memory_space<vmem>>, vector<32x32xf32>
    %cst_47 = arith.constant dense<0.000000e+00> : vector<8x32xf32>
    %95 = tpu.matmul %93, %94, %cst_47 {dimension_numbers = #tpu.dot_dimension_numbers<[1], [0], [0], [1], [0, 0, 1, 1], [], []>} : vector<8x32xf32>, vector<32x32xf32>, vector<8x32xf32> -> vector<8x32xf32>
    %c0_48 = arith.constant 0 : index
    %c0_49 = arith.constant 0 : index
    %96 = vector.load %arg15[%c0_48, %c0_49] : memref<1x32xf32, #tpu.memory_space<vmem>>, vector<1x32xf32>
    %97 = vector.broadcast %96 : vector<1x32xf32> to vector<8x32xf32>
    %98 = arith.addf %95, %97 : vector<8x32xf32>
    %cst_50 = arith.constant 0.00999999977 : f32
    %99 = vector.broadcast %cst_50 : f32 to vector<8x32xf32>
    %100 = arith.mulf %99, %98 : vector<8x32xf32>
    %101 = arith.maximumf %98, %100 : vector<8x32xf32>
    %c0_51 = arith.constant 0 : index
    %c0_52 = arith.constant 0 : index
    %102 = vector.load %arg16[%c0_51, %c0_52] : memref<32x8xf32, #tpu.memory_space<vmem>>, vector<32x8xf32>
    %cst_53 = arith.constant dense<0.000000e+00> : vector<8x8xf32>
    %103 = tpu.matmul %101, %102, %cst_53 {dimension_numbers = #tpu.dot_dimension_numbers<[1], [0], [0], [1], [0, 0, 1, 1], [], []>} : vector<8x32xf32>, vector<32x8xf32>, vector<8x8xf32> -> vector<8x8xf32>
    %c0_54 = arith.constant 0 : index
    %c0_55 = arith.constant 0 : index
    %104 = vector.load %arg17[%c0_54, %c0_55] : memref<1x8xf32, #tpu.memory_space<vmem>>, vector<1x8xf32>
    %105 = vector.broadcast %104 : vector<1x8xf32> to vector<8x8xf32>
    %106 = arith.addf %103, %105 : vector<8x8xf32>
    %c0_56 = arith.constant 0 : index
    %c0_57 = arith.constant 0 : index
    %107 = vector.load %arg18[%c0_56, %c0_57] : memref<8x8xf32, #tpu.memory_space<vmem>>, vector<8x8xf32>
    tpu.vector_store %arg18[%c0_56, %c0_57], %106 {strides = array<i32>} : memref<8x8xf32, #tpu.memory_space<vmem>>, vector<8x8xf32>,
    return
  }
  func.func @transform_0(%arg0: i32) -> (i32, i32, i32) {
    %c0_i32 = arith.constant 0 : i32
    %c0_i32_0 = arith.constant 0 : i32
    %c0_i32_1 = arith.constant 0 : i32
    return %c0_i32, %arg0, %c0_i32_0 : i32, i32, i32
  }
  func.func @transform_1(%arg0: i32) -> (i32, i32) {
    %c0_i32 = arith.constant 0 : i32
    %c0_i32_0 = arith.constant 0 : i32
    return %arg0, %c0_i32 : i32, i32
  }
  func.func @transform_2(%arg0: i32) -> (i32, i32) {
    %c0_i32 = arith.constant 0 : i32
    %c0_i32_0 = arith.constant 0 : i32
    %c0_i32_1 = arith.constant 0 : i32
    return %c0_i32, %c0_i32_0 : i32, i32
  }
  func.func @transform_3(%arg0: i32) -> (i32, i32) {
    %c0_i32 = arith.constant 0 : i32
    %c0_i32_0 = arith.constant 0 : i32
    %c0_i32_1 = arith.constant 0 : i32
    return %c0_i32, %c0_i32_0 : i32, i32
  }
  func.func @transform_4(%arg0: i32) -> (i32, i32, i32) {
    %c0_i32 = arith.constant 0 : i32
    %c0_i32_0 = arith.constant 0 : i32
    %c0_i32_1 = arith.constant 0 : i32
    %c0_i32_2 = arith.constant 0 : i32
    return %c0_i32, %c0_i32_0, %c0_i32_1 : i32, i32, i32
  }
  func.func @transform_5(%arg0: i32) -> (i32, i32, i32) {
    %c0_i32 = arith.constant 0 : i32
    %c0_i32_0 = arith.constant 0 : i32
    %c0_i32_1 = arith.constant 0 : i32
    %c0_i32_2 = arith.constant 0 : i32
    return %c0_i32, %c0_i32_0, %c0_i32_1 : i32, i32, i32
  }
  func.func @transform_6(%arg0: i32) -> (i32, i32) {
    %c0_i32 = arith.constant 0 : i32
    %c0_i32_0 = arith.constant 0 : i32
    %c0_i32_1 = arith.constant 0 : i32
    return %c0_i32, %c0_i32_0 : i32, i32
  }
  func.func @transform_7(%arg0: i32) -> (i32, i32) {
    %c0_i32 = arith.constant 0 : i32
    %c0_i32_0 = arith.constant 0 : i32
    %c0_i32_1 = arith.constant 0 : i32
    return %c0_i32, %c0_i32_0 : i32, i32
  }
  func.func @transform_8(%arg0: i32) -> (i32, i32) {
    %c0_i32 = arith.constant 0 : i32
    %c0_i32_0 = arith.constant 0 : i32
    %c0_i32_1 = arith.constant 0 : i32
    return %c0_i32, %c0_i32_0 : i32, i32
  }
  func.func @transform_9(%arg0: i32) -> (i32, i32) {
    %c0_i32 = arith.constant 0 : i32
    %c0_i32_0 = arith.constant 0 : i32
    %c0_i32_1 = arith.constant 0 : i32
    return %c0_i32, %c0_i32_0 : i32, i32
  }
  func.func @transform_10(%arg0: i32) -> (i32, i32) {
    %c0_i32 = arith.constant 0 : i32
    %c0_i32_0 = arith.constant 0 : i32
    %c0_i32_1 = arith.constant 0 : i32
    return %c0_i32, %c0_i32_0 : i32, i32
  }
  func.func @transform_11(%arg0: i32) -> (i32, i32) {
    %c0_i32 = arith.constant 0 : i32
    %c0_i32_0 = arith.constant 0 : i32
    %c0_i32_1 = arith.constant 0 : i32
    return %c0_i32, %c0_i32_0 : i32, i32
  }
  func.func @transform_12(%arg0: i32) -> (i32, i32) {
    %c0_i32 = arith.constant 0 : i32
    %c0_i32_0 = arith.constant 0 : i32
    %c0_i32_1 = arith.constant 0 : i32
    return %c0_i32, %c0_i32_0 : i32, i32
  }
  func.func @transform_13(%arg0: i32) -> (i32, i32) {
    %c0_i32 = arith.constant 0 : i32
    %c0_i32_0 = arith.constant 0 : i32
    %c0_i32_1 = arith.constant 0 : i32
    return %c0_i32, %c0_i32_0 : i32, i32
  }
  func.func @transform_14(%arg0: i32) -> (i32, i32) {
    %c0_i32 = arith.constant 0 : i32
    %c0_i32_0 = arith.constant 0 : i32
    %c0_i32_1 = arith.constant 0 : i32
    return %c0_i32, %c0_i32_0 : i32, i32
  }
  func.func @transform_15(%arg0: i32) -> (i32, i32) {
    %c0_i32 = arith.constant 0 : i32
    %c0_i32_0 = arith.constant 0 : i32
    %c0_i32_1 = arith.constant 0 : i32
    return %c0_i32, %c0_i32_0 : i32, i32
  }
  func.func @transform_16(%arg0: i32) -> (i32, i32) {
    %c0_i32 = arith.constant 0 : i32
    %c0_i32_0 = arith.constant 0 : i32
    %c0_i32_1 = arith.constant 0 : i32
    return %c0_i32, %c0_i32_0 : i32, i32
  }
  func.func @transform_17(%arg0: i32) -> (i32, i32) {
    %c0_i32 = arith.constant 0 : i32
    %c0_i32_0 = arith.constant 0 : i32
    return %arg0, %c0_i32 : i32, i32
  }
}

</mosaic_0001>

<bundles_post_ra>
// kernel: tpu_custom_call.1
= control target key start
LH: loop header
LB: loop body
LE: loop exit
PB: predicated region body
PF: predicated region fallthrough
CT: control target
= control target key end

     0   :  { %s3266_s0 = inlined_call_operand.vmem [shape: f32[8,16,8], index: 0, kind: input, shape index: {}]   ;;  %s3267_s1 = inlined_call_operand.vmem [shape: f32[16,48], index: 1, kind: input, shape index: {}]   ;;  %s3268_s2 = inlined_call_operand.vmem [shape: f32[24,32], index: 2, kind: input, shape index: {}]   ;;  %s3269_s3 = inlined_call_operand.vmem [shape: f32[1,32], index: 3, kind: input, shape index: {}]   ;;  %s3270_s4 = inlined_call_operand.vmem [shape: f32[2,160,32], index: 4, kind: input, shape index: {}]   ;;  %s3271_s5 = inlined_call_operand.vmem [shape: f32[2,1,32], index: 5, kind: input, shape index: {}]   ;;  %s3272_s6 = inlined_call_operand.vmem [shape: f32[256,32], index: 6, kind: input, shape index: {}]   ;;  %s3273_s7 = inlined_call_operand.vmem [shape: f32[1,32], index: 7, kind: input, shape index: {}]   ;;  %s3274_s8 = inlined_call_operand.vmem [shape: f32[48,64], index: 8, kind: input, shape index: {}]   ;;  %s3275_s9 = inlined_call_operand.vmem [shape: f32[1,64], index: 9, kind: input, shape index: {}]   ;;  %s3276_s10 = inlined_call_operand.vmem [shape: f32[32,32], index: 10, kind: input, shape index: {}]   ;;  %s3277_s11 = inlined_call_operand.vmem [shape: f32[64,32], index: 11, kind: input, shape index: {}]   ;;  %s3278_s12 = inlined_call_operand.vmem [shape: f32[1,32], index: 12, kind: input, shape index: {}]   ;;  %s3279_s13 = inlined_call_operand.vmem [shape: f32[32,32], index: 13, kind: input, shape index: {}]   ;;  %s3280_s14 = inlined_call_operand.vmem [shape: f32[1,32], index: 14, kind: input, shape index: {}]   ;;  %s3281_s15 = inlined_call_operand.vmem [shape: f32[32,8], index: 15, kind: input, shape index: {}]   ;;  %s3282_s16 = inlined_call_operand.vmem [shape: f32[1,8], index: 16, kind: input, shape index: {}]   ;;  %s3283_s17 = inlined_call_operand.vmem [shape: f32[16,8], index: 17, kind: output, shape index: {}]  }
   0x1   :  { %3289 = sst [smem:[#allocation3_spill]] %s3266_s0 }
   0x2   :  { %3290 = sst [smem:[#allocation4_spill]] %s3267_s1 }
   0x3   :  { %3291 = sst [smem:[#allocation5_spill]] %s3268_s2 }
   0x4   :  { %3292 = sst [smem:[#allocation6_spill]] %s3269_s3 }
   0x5   :  { %s2576_s24 = smov 0   ;;  %s2578_s25 = smov 0  }
   0x6   :  { %s2580_s26 = smov 0  }
   0x7 LB: > { %s2593_s28 = sadd.s32 1, %s2476_s26   ;;  %s34_s0 = sadd.s32 1, %s2472_s25  ;;  %s2476_s26 = sphi %s2580_s26, %s3304_s26   ;;  %s2472_s25 = sphi %s2578_s25, %s3303_s25   ;;  %s2468_s24 = sphi %s2576_s24, %s3302_s24  }
   0x8   : > { %s31_s29 = ssub.s32 %s2476_s26, %s2593_s28  ;;  %p41_p1 = scmp.ne.s32.totalorder %s2472_s25, %s2468_s24 }
   0x9   : > { %p32_p0 = scmp.eq.s32.totalorder %s31_s29, 0  ;;  %p42_p2 = scmp.eq.s32.totalorder %s2476_s26, 0 }
   0xa   : > { %p1993_p4 = scmp.ge.s32.totalorder %s2476_s26, 2 }
   0xb   : > { %s2602_s30 = scalar_select %p32_p0, %s2472_s25, %s34_s0  }
   0xc   : > { %p43_p3 = por %p42_p2, %p41_p1  ;;  %479 = sbr.rel (%p1993_p4) target bundleno = 33 (0x21), region = 76 }
  0x13   : > { %482 = sbr.rel (!%p43_p3) target bundleno = 33 (0x21), region = 80  ;;  %s484_s18 = sand.u32 (%p43_p3), 1, %s2472_s25  }
  0x14   : > { %s1995_s19 = sshll.u32 (%p43_p3), %s2476_s26, 3  ;;  %s1994_s1 = sshll.u32 (%p43_p3), %s484_s18, 6 }
  0x15   : > { %s3293_s22 = sld [smem:[#allocation3_spill]] (%p43_p3)  ;;  %s486_s29 = scalar_lea.vmem (%p43_p3), [#allocation2], %s1994_s1 }
  0x1b   : > { %s488_s23 = scalar_lea.vmem %s3293_s22, %s1995_s19 }
  0x1c   : > { %v530_v0 = vld [vmem:[%s488_s23] sm:$0xff]  ;;  %v532_v1 = vld [vmem:[%s488_s23 + $0x10] sm:$0xff] }
  0x1d   : > { %v534_v2 = vld [vmem:[%s488_s23 + $0x20] sm:$0xff]  ;;  %531 = vst [vmem:[%s486_s29] sm:$0xff] %v530_v0  ;;  %533 = vst [vmem:[%s486_s29 + $0x8] sm:$0xff] %v532_v1  ;;  %v536_v3 = vld [vmem:[%s488_s23 + $0x30] sm:$0xff] }
  0x1e   : > { %535 = vst [vmem:[%s486_s29 + $0x10] sm:$0xff] %v534_v2  ;;  %v538_v4 = vld [vmem:[%s488_s23 + $0x40] sm:$0xff]  ;;  %v540_v5 = vld [vmem:[%s488_s23 + $0x50] sm:$0xff]  ;;  %537 = vst [vmem:[%s486_s29 + $0x18] sm:$0xff] %v536_v3 }
  0x1f   : > { %539 = vst [vmem:[%s486_s29 + $0x20] sm:$0xff] %v538_v4  ;;  %541 = vst [vmem:[%s486_s29 + $0x28] sm:$0xff] %v540_v5  ;;  %v542_v6 = vld [vmem:[%s488_s23 + $0x60] sm:$0xff]  ;;  %v544_v7 = vld [vmem:[%s488_s23 + $0x70] sm:$0xff] }
  0x20   : > { %543 = vst [vmem:[%s486_s29 + $0x30] sm:$0xff] %v542_v6  ;;  %545 = vst [vmem:[%s486_s29 + $0x38] sm:$0xff] %v544_v7 }
  0x21 PF: > { %p1996_p5 = scmp.ge.s32.totalorder %s2476_s26, 1  ;;  %p557_p6 = scmp.lt.s32.totalorder %s2476_s26, 3 }
  0x23   : > { %p558_p7 = pnand %p1996_p5, %p557_p6 }
  0x24   : > { %s564_s0 = sand.u32 (!%p558_p7), 1, %s2468_s24   ;;  %s3294_s2 = sld [smem:[#allocation5_spill]] (!%p558_p7)  ;;  %vm691_vm0 = vcmask (!%p558_p7), 64512   ;;  %vm700_vm1 = vcmask (!%p558_p7), 130048   ;;  %vm715_vm2 = vcmask (!%p558_p7), 195584   ;;  %v853_v51 = vld [vmem:[%s3270_s4] sm:$0xff] (!%p558_p7) }
  0x25   : > { %561 = sbr.rel (%p558_p7) target bundleno = 2095 (0x82f), region = 122  ;;  %s1997_s21 = sshll.u32 (!%p558_p7), %s564_s0, 6  ;;  %v854_v52 = vld [vmem:[%s3270_s4 + $0x8] sm:$0xff] (!%p558_p7)  ;;  %v855_v53 = vld [vmem:[%s3270_s4 + $0x10] sm:$0xff] (!%p558_p7)  ;;  %v2480_v54 = vmov (!%p558_p7), 0.0|0.0   ;;  %v856_v56 = vld [vmem:[%s3270_s4 + $0x18] sm:$0xff] (!%p558_p7) }
  0x26   : > { %s566_s22 = scalar_lea.vmem (!%p558_p7), [#allocation2], %s1997_s21  ;;  %s2478_s27 = smov (!%p558_p7), 16   ;;  %2226 = vmatprep.subr.bf16.mxu1 (!%p558_p7), %v2480_v54  ;;  %v2227_v55 = vpack.c.bf16 (!%p558_p7), %v854_v52, %v853_v51  ;;  %v2230_v57 = vpack.c.bf16 (!%p558_p7), %v856_v56, %v855_v53  ;;  %v857_v58 = vld [vmem:[%s3270_s4 + $0x20] sm:$0xff] (!%p558_p7)  ;;  %v858_v59 = vld [vmem:[%s3270_s4 + $0x28] sm:$0xff] (!%p558_p7)  ;;  %v859_v61 = vld [vmem:[%s3270_s4 + $0x30] sm:$0xff] (!%p558_p7)  ;;  %vm942_vm3 = vcmask (!%p558_p7), 261120  }
  0x27   : > { %v627_v11 = vld [vmem:[%s566_s22 + $0x8] sm:$0xff] (!%p558_p7)  ;;  %v626_v12 = vld [vmem:[%s566_s22] sm:$0xff] (!%p558_p7)  ;;  %s2479_s24 = smov (!%p558_p7), 8   ;;  %v628_v14 = vld [vmem:[%s566_s22 + $0x10] sm:$0xff] (!%p558_p7)  ;;  %v2233_v60 = vpack.c.bf16 (!%p558_p7), %v858_v59, %v857_v58  ;;  %s3295_s3 = sld [smem:[#allocation6_spill]] (!%p558_p7)  ;;  %vm949_vm4 = vcmask (!%p558_p7), 523264  }
  0x28   : > { %670 = vrot.lane.b32.xlu1 (!%p558_p7), %v627_v11, %s2478_s27  ;;  %646 = vrot.lane.b32.xlu0 (!%p558_p7), %v626_v12, %s2479_s24  ;;  %v629_v15 = vld [vmem:[%s566_s22 + $0x18] sm:$0xff] (!%p558_p7)  ;;  %v630_v16 = vld [vmem:[%s566_s22 + $0x20] sm:$0xff] (!%p558_p7)  ;;  %s3288_s29 = smov (!%p558_p7), 32   ;;  %vm958_vm5 = vcmask (!%p558_p7), 785408   ;;  %s3296_s20 = smov (!%p558_p7), 64   ;;  %vm2484_vm6 = vmmov (!%p558_p7), 0  }
  0x29   : > { %v631_v17 = vld [vmem:[%s566_s22 + $0x28] sm:$0xff] (!%p558_p7)  ;;  %v632_v18 = vld [vmem:[%s566_s22 + $0x30] sm:$0xff] (!%p558_p7)  ;;  %v633_v19 = vld [vmem:[%s566_s22 + $0x38] sm:$0xff] (!%p558_p7)  ;;  %2228 = vmatpush1.bf16.msra.mxu1 (!%p558_p7), %v2227_v55  ;;  %s3297_s21 = smov (!%p558_p7), 96   ;;  %s3300_s18 = sld [smem:[#allocation4_spill]] (!%p558_p7)  ;;  %vm1504_vm7 = vcmask (!%p558_p7), 392192  }
  0x2a   : > { %v634_v8 = vld [vmem:[%s3294_s2] sm:$0xff] (!%p558_p7)  ;;  %v635_v9 = vld [vmem:[%s3294_s2 + $0x8] sm:$0xff] (!%p558_p7)  ;;  %v636_v13 = vld [vmem:[%s3294_s2 + $0x10] sm:$0xff] (!%p558_p7)  ;;  %2229 = vmatprep.subr.bf16.mxu1 (!%p558_p7), %v2480_v54  ;;  %s3301_s2 = smov (!%p558_p7), 32  }
  0x2b   : > { %v2222_v10 = vpack.c.bf16 (!%p558_p7), %v635_v9, %v634_v8  ;;  %v860_v62 = vld [vmem:[%s3270_s4 + $0x38] sm:$0xff] (!%p558_p7)  ;;  %v861_v0 = vld [vmem:[%s3270_s4 + $0x40] sm:$0xff] (!%p558_p7)  ;;  %v862_v1 = vld [vmem:[%s3270_s4 + $0x48] sm:$0xff] (!%p558_p7) }
  0x2c   : > { %672 = vrot.lane.b32.xlu1 %v628_v14, %s2478_s27  ;;  %648 = vrot.lane.b32.xlu0 %v627_v11, %s2479_s24  ;;  %v2236_v63 = vpack.c.bf16 %v860_v62, %v859_v61  ;;  %v2239_v2 = vpack.c.bf16 %v862_v1, %v861_v0  ;;  %v863_v3 = vld [vmem:[%s3270_s4 + $0x50] sm:$0xff]  ;;  %v864_v4 = vld [vmem:[%s3270_s4 + $0x58] sm:$0xff] }
  0x2d   : > { %2223 = vmatprep.subr.bf16.mxu0 %v2222_v10  ;;  %2231 = vmatpush1.bf16.msra.mxu1 %v2230_v57  ;;  %v2242_v5 = vpack.c.bf16 %v864_v4, %v863_v3  ;;  %v865_v6 = vld [vmem:[%s3270_s4 + $0x60] sm:$0xff]  ;;  %v866_v7 = vld [vmem:[%s3270_s4 + $0x68] sm:$0xff]  ;;  %v867_v9 = vld [vmem:[%s3270_s4 + $0x70] sm:$0xff] }
  0x2e   : > { %2225 = vmatpush3.bf16.msra.mxu0 %v2222_v10  ;;  %2232 = vmatprep.subr.bf16.mxu1 %v2480_v54  ;;  %v2245_v8 = vpack.c.bf16 %v866_v7, %v865_v6  ;;  %v868_v10 = vld [vmem:[%s3270_s4 + $0x78] sm:$0xff] }
  0x2f   : > { %2141 = vmatprep.subr.mxu0 %v636_v13 }
  0x30   : > { %652 = vrot.lane.b32.xlu1 %v629_v15, %s2479_s24  ;;  %650 = vrot.lane.b32.xlu0 %v628_v14, %s2479_s24 }
  0x31   : > { %2234 = vmatpush1.bf16.msra.mxu1 %v2233_v60 }
  0x32   : > { %2142 = vmatpush3.msra.mxu0 %v636_v13  ;;  %2235 = vmatprep.subr.bf16.mxu1 %v2480_v54  ;;  %v870_v13 = vld [vmem:[%s3270_s4 + $0x88] sm:$0xff] }
  0x33   : > { %2256 = vmatprep.subr.bf16.mxu0 %v2480_v54 }
  0x34   : > { %676 = vrot.lane.b32.xlu1 %v630_v16, %s2478_s27  ;;  %674 = vrot.lane.b32.xlu0 %v629_v15, %s2478_s27 }
  0x35   : > { %2237 = vmatpush1.bf16.msra.mxu1 %v2236_v63 }
  0x36   : > { %2238 = vmatprep.subr.bf16.mxu1 %v2480_v54 }
  0x38   : > { %656 = vrot.lane.b32.xlu1 %v631_v17, %s2479_s24  ;;  %654 = vrot.lane.b32.xlu0 %v630_v16, %s2479_s24 }
  0x39   : > { %2240 = vmatpush1.bf16.msra.mxu1 %v2239_v2 }
  0x3a   : > { %2241 = vmatprep.subr.bf16.mxu1 %v2480_v54 }
  0x3c   : > { %680 = vrot.lane.b32.xlu1 %v632_v18, %s2478_s27  ;;  %678 = vrot.lane.b32.xlu0 %v631_v17, %s2478_s27 }
  0x3d   : > { %2243 = vmatpush1.bf16.msra.mxu1 %v2242_v5 }
  0x3e   : > { %2244 = vmatprep.subr.bf16.mxu1 %v2480_v54 }
  0x40   : > { %658 = vrot.lane.b32.xlu0 %v632_v18, %s2479_s24  ;;  %660 = vrot.lane.b32.xlu1 %v633_v19, %s2479_s24  ;;  %s3286_s24 = smov 64  }
  0x41   : > { %2246 = vmatpush1.bf16.msra.mxu1 %v2245_v8 }
  0x42   : > { %2247 = vmatprep.subr.bf16.mxu1 %v2480_v54 }
  0x44   : > { %682 = vrot.lane.b32.xlu0 %v633_v19, %s2478_s27  ;;  %s3284_s27 = smov 96  }
  0x9a   : > { %v671_v20 = vpop.permute.xlu1 %670  ;;  %v647_v21 = vpop.permute.xlu0 %646 }
  0x9b   : > { %v692_v22 = vsel %vm691_vm0, %v626_v12, %v647_v21 }
  0x9c   : > { %v701_v23 = vsel %vm700_vm1, %v692_v22, %v671_v20 }
  0x9d   : > { %2143 = vmatprep.mubr.msk.f32.mxu0 %vm715_vm2, %v701_v23 }
  0x9e   : > { %v673_v24 = vpop.permute.xlu1 %672  ;;  %v649_v25 = vpop.permute.xlu0 %648 }
  0x9f   : > { %v693_v26 = vsel %vm691_vm0, %v626_v12, %v649_v25  ;;  %v869_v12 = vld [vmem:[%s3270_s4 + $0x80] sm:$0xff] }
  0xa0   : > { %v702_v27 = vsel %vm700_vm1, %v693_v26, %v673_v24 }
  0xa1   : > { %2144 = vmatmul.mubr.msk.f32.vlgmr.msra.gmra.mrb[0].mxu0 %vm715_vm2, %v702_v27 }
  0xa2   : > { %v653_v28 = vpop.permute.xlu1 %652  ;;  %v651_v29 = vpop.permute.xlu0 %650 }
  0xa3   : > { %v695_v30 = vsel %vm691_vm0, %v628_v14, %v653_v28  ;;  %v694_v31 = vsel %vm691_vm0, %v627_v11, %v651_v29  ;;  %v2248_v11 = vpack.c.bf16 %v868_v10, %v867_v9  ;;  %v2251_v14 = vpack.c.bf16 %v870_v13, %v869_v12 }
  0xa5   : > { %2249 = vmatpush1.bf16.msra.mxu1 %v2248_v11 }
  0xa6   : > { %v677_v32 = vpop.permute.xlu1 %676  ;;  %v675_v33 = vpop.permute.xlu0 %674  ;;  %2250 = vmatprep.subr.bf16.mxu1 %v2480_v54 }
  0xa7   : > { %v704_v34 = vsel %vm700_vm1, %v695_v30, %v677_v32  ;;  %v703_v35 = vsel %vm700_vm1, %v694_v31, %v675_v33 }
  0xa8   : > { %2146 = vmatprep.mubr.msk.f32.mxu0 %vm715_vm2, %v703_v35 }
  0xa9   : > { %2147 = vmatmul.mubr.msk.f32.gmra.mrb[2].mxu0 %vm715_vm2, %v704_v34  ;;  %2252 = vmatpush1.bf16.msra.mxu1 %v2251_v14 }
  0xaa   : > { %v657_v36 = vpop.permute.xlu1 %656  ;;  %v655_v37 = vpop.permute.xlu0 %654  ;;  %2253 = vmatprep.subr.bf16.mxu1 %v2480_v54 }
  0xab   : > { %v697_v38 = vsel %vm691_vm0, %v630_v16, %v657_v36  ;;  %v696_v39 = vsel %vm691_vm0, %v629_v15, %v655_v37  ;;  %v2000_v15 = vld [vmem:[%s3295_s3] ss:$0 sm:$0xff] }
  0xae   : > { %v681_v40 = vpop.permute.xlu1 %680  ;;  %v679_v41 = vpop.permute.xlu0 %678 }
  0xaf   : > { %v706_v42 = vsel %vm700_vm1, %v697_v38, %v681_v40  ;;  %v705_v43 = vsel %vm700_vm1, %v696_v39, %v679_v41 }
  0xb0   : > { %2149 = vmatprep.mubr.msk.f32.mxu0 %vm715_vm2, %v705_v43 }
  0xb1   : > { %2150 = vmatmul.mubr.msk.f32.gmra.mrb[4].mxu0 %vm715_vm2, %v706_v42 }
  0xb2   : > { %v659_v44 = vpop.permute.xlu0 %658  ;;  %v661_v45 = vpop.permute.xlu1 %660 }
  0xb3   : > { %v698_v46 = vsel %vm691_vm0, %v631_v17, %v659_v44  ;;  %v699_v47 = vsel %vm691_vm0, %v632_v18, %v661_v45  ;;  %v871_v17 = vld [vmem:[%s3270_s4 + $0x90] sm:$0xff]  ;;  %v872_v18 = vld [vmem:[%s3270_s4 + $0x98] sm:$0xff] }
  0xb4   : > { %v2254_v21 = vpack.c.bf16 %v872_v18, %v871_v17 }
  0xb6   : > { %v683_v48 = vpop.permute.xlu0 %682  ;;  %2255 = vmatpush1.bf16.msra.mxu1 %v2254_v21 }
  0xb7   : > { %v707_v49 = vsel %vm700_vm1, %v698_v46, %v683_v48  ;;  %v708_v50 = vsel %vm700_vm1, %v699_v47, %v683_v48 }
  0xb8   : > { %2152 = vmatprep.mubr.msk.f32.mxu0 %vm715_vm2, %v707_v49 }
  0xb9   : > { %2153 = vmatmul.mubr.msk.f32.gmra.mrb[6].mxu0 %vm715_vm2, %v708_v50 }
 0x174   : > { %v2145_v16 = vpop.f32.mrb[0].mxu0 }
 0x175   : > { %v812_v19 = vadd.f32 %v2145_v16, %v2000_v15  ;;  %v806_v20 = vpop.f32.mrb[1].mxu0 }
 0x176   : > { %v807_v22 = vadd.f32 %v2000_v15, %v806_v20 }
 0x177   : > { %v2720_v23 = vmax.f32 %v812_v19, 0.0 }
 0x178   : > { %v2722_v24 = vmax.f32 %v807_v22, 0.0 }
 0x17a   : > { %880 = vrot.lane.b32.xlu1 %v2722_v24, %s3288_s29  ;;  %v2389_v25 = vpack.i.bf16 %v2720_v23, %v2722_v24 }
 0x17c   : > { %2390 = vrot.lane.b32.xlu0 %v2389_v25, %s3286_s24  ;;  %v2148_v26 = vpop.f32.mrb[2].mxu0 }
 0x17d   : > { %v822_v27 = vadd.f32 %v2148_v26, %v2000_v15  ;;  %v816_v28 = vpop.f32.mrb[3].mxu0 }
 0x17e   : > { %v817_v29 = vadd.f32 %v2000_v15, %v816_v28 }
 0x17f   : > { %v2729_v30 = vmax.f32 %v822_v27, 0.0 }
 0x180   : > { %v2731_v31 = vmax.f32 %v817_v29, 0.0 }
 0x182   : > { %v2399_v32 = vpack.i.bf16 %v2729_v30, %v2731_v31  ;;  %v2404_v37 = vpack.i.bf16 %v2731_v31, %v2720_v23 }
 0x184   : > { %2400 = vrot.lane.b32.xlu0 %v2399_v32, %s3286_s24  ;;  %2395 = vrot.lane.b32.xlu1 %v2399_v32, %s3284_s27  ;;  %v2151_v33 = vpop.f32.mrb[4].mxu0 }
 0x185   : > { %v832_v34 = vadd.f32 %v2151_v33, %v2000_v15  ;;  %v826_v35 = vpop.f32.mrb[5].mxu0 }
 0x186   : > { %v827_v36 = vadd.f32 %v2000_v15, %v826_v35  ;;  %v2018_v35 = vld [vmem:[%s3270_s4 + $0xa0] sm:$0xff] }
 0x187   : > { %v2739_v38 = vmax.f32 %v832_v34, 0.0 }
 0x188   : > { %v2741_v39 = vmax.f32 %v827_v36, 0.0  ;;  %2405 = vrot.lane.b32.xlu0 %v2404_v37, %s3288_s29  ;;  %v2019_v36 = vld [vmem:[%s3270_s4 + $0xa8] sm:$0xff]  ;;  %v2020_v37 = vld [vmem:[%s3270_s4 + $0xb0] sm:$0xff] }
 0x18a   : > { %2010 = vmatprep.mubr.msk.f32.mxu1 %vm942_vm3, %v2741_v39  ;;  %v2409_v40 = vpack.i.bf16 %v2739_v38, %v2741_v39 }
 0x18c   : > { %2410 = vrot.lane.b32.xlu1 %v2409_v40, %s3284_s27  ;;  %v2154_v41 = vpop.f32.mrb[6].mxu0  ;;  %v2257_v40 = vpack.c.bf16 %v2019_v36, %v2018_v35 }
 0x18d   : > { %v836_v42 = vpop.f32.mrb[7].mxu0  ;;  %v842_v45 = vadd.f32 %v2154_v41, %v2000_v15  ;;  %v2021_v41 = vld [vmem:[%s3270_s4 + $0xb8] sm:$0xff] }
 0x18e   : > { %v837_v43 = vadd.f32 %v2000_v15, %v836_v42  ;;  %2258 = vmatpush1.bf16.msra.mxu0 %v2257_v40  ;;  %v2260_v42 = vpack.c.bf16 %v2021_v41, %v2020_v37 }
 0x18f   : > { %v2757_v46 = vmax.f32 %v842_v45, 0.0  ;;  %2259 = vmatprep.subr.bf16.mxu0 %v2480_v54  ;;  %v2023_v45 = vld [vmem:[%s3270_s4 + $0xc8] sm:$0xff] }
 0x190   : > { %v2749_v44 = vmax.f32 %v837_v43, 0.0  ;;  %886 = vrot.lane.b32.xlu1 %v2729_v30, %s3288_s29  ;;  %v2022_v43 = vld [vmem:[%s3270_s4 + $0xc0] sm:$0xff] }
 0x192   : > { %932 = vrot.lane.b32.xlu0 %v2749_v44, %s3284_s27  ;;  %2261 = vmatpush1.bf16.msra.mxu0 %v2260_v42 }
 0x193   : > { %2262 = vmatprep.subr.bf16.mxu0 %v2480_v54 }
 0x194   : > { %908 = vrot.lane.b32.xlu1 %v2741_v39, %s3286_s24 }
 0x196   : > { %910 = vrot.lane.b32.xlu0 %v2739_v38, %s3286_s24 }
 0x198   : > { %934 = vrot.lane.b32.xlu1 %v2757_v46, %s3284_s27 }
 0x19a   : > { %888 = vrot.lane.b32.xlu0 %v2741_v39, %s3288_s29 }
 0x19c   : > { %912 = vrot.lane.b32.xlu1 %v2749_v44, %s3286_s24 }
 0x19e   : > { %890 = vrot.lane.b32.xlu0 %v2739_v38, %s3288_s29 }
 0x1a0   : > { %914 = vrot.lane.b32.xlu1 %v2757_v46, %s3286_s24  ;;  %s3298_s24 = sadd.s32 4294967295, %s2476_s26  }
 0x1a1   : > { %p618_p8 = scmp.lt.s32.totalorder %s3298_s24, 1  ;;  %s3299_s3 = smov %s3298_s24 }
 0x1a3   : > { %s3306_s3 = smov (!%p618_p8, %s3299_s3), 1 }
 0x1a4   : > { %s1998_s0 = sshll.u32 %s3306_s3, 3 }
 0x1a5   : > { %s621_s19 = scalar_lea.vmem %s3300_s18, %s1998_s0  ;;  %s625_s22 = scalar_lea.vmem %s3283_s17, %s1998_s0 }
 0x1ec   : > { %v881_v48 = vpop.permute.xlu1 %880 }
 0x1ed   : > { %v943_v52 = vsel %vm942_vm3, %v2722_v24, %v881_v48  ;;  %v2024_v48 = vld [vmem:[%s3270_s4 + $0xd0] sm:$0xff] }
 0x1ee   : > { %v2391_v47 = vpop.permute.xlu0 %2390 }
 0x1ef   : > { %v2392_v49 = vunpack.i.l.bf16 %v2391_v47  ;;  %v2393_v55 = vunpack.i.h.bf16 %v2391_v47  ;;  %v2263_v47 = vpack.c.bf16 %v2023_v45, %v2022_v43 }
 0x1f1   : > { %v950_v56 = vsel %vm949_vm4, %v943_v52, %v2392_v49  ;;  %v951_v61 = vsel %vm949_vm4, %v943_v52, %v2393_v55  ;;  %v2025_v49 = vld [vmem:[%s3270_s4 + $0xd8] sm:$0xff]  ;;  %2264 = vmatpush1.bf16.msra.mxu0 %v2263_v47  ;;  %v2028_v55 = vld [vmem:[%s3270_s4 + $0xf0] sm:$0xff] }
 0x1f2   : > { %2265 = vmatprep.subr.bf16.mxu0 %v2480_v54 }
 0x1f6   : > { %v2396_v50 = vpop.permute.xlu1 %2395  ;;  %v2401_v51 = vpop.permute.xlu0 %2400 }
 0x1f7   : > { %v2397_v53 = vunpack.i.l.bf16 %v2396_v50  ;;  %v2398_v57 = vunpack.i.h.bf16 %v2396_v50  ;;  %v2402_v60 = vunpack.i.l.bf16 %v2401_v51  ;;  %v2403_v6 = vunpack.i.h.bf16 %v2401_v51  ;;  %v2026_v51 = vld [vmem:[%s3270_s4 + $0xe0] sm:$0xff] }
 0x1f8   : > { %v2266_v50 = vpack.c.bf16 %v2025_v49, %v2024_v48 }
 0x1f9   : > { %v959_v58 = vsel %vm958_vm5, %v950_v56, %v2397_v53  ;;  %v960_v63 = vsel %vm958_vm5, %v951_v61, %v2398_v57  ;;  %v952_v2 = vsel %vm949_vm4, %v943_v52, %v2402_v60  ;;  %v2027_v52 = vld [vmem:[%s3270_s4 + $0xe8] sm:$0xff]  ;;  %v2029_v56 = vld [vmem:[%s3270_s4 + $0xf8] sm:$0xff]  ;;  %v2032_v61 = vld [vmem:[%s3270_s4 + $0x110] sm:$0xff] }
 0x1fa   : > { %v2406_v59 = vpop.permute.xlu0 %2405  ;;  %1046 = vmatmul.mubr.f32.vlgmr.msra.gmra.mrb[0].mxu1 %v959_v58  ;;  %2267 = vmatpush1.bf16.msra.mxu0 %v2266_v50  ;;  %v2269_v53 = vpack.c.bf16 %v2027_v52, %v2026_v51  ;;  %v2272_v57 = vpack.c.bf16 %v2029_v56, %v2028_v55  ;;  %v2030_v58 = vld [vmem:[%s3270_s4 + $0x100] sm:$0xff] }
 0x1fb   : > { %2011 = vmatprep.mubr.msk.f32.mxu1 %vm942_vm3, %v2739_v38  ;;  %v2407_v62 = vunpack.i.l.bf16 %v2406_v59  ;;  %v2408_v7 = vunpack.i.h.bf16 %v2406_v59  ;;  %2268 = vmatprep.subr.bf16.mxu0 %v2480_v54  ;;  %v2031_v59 = vld [vmem:[%s3270_s4 + $0x108] sm:$0xff] }
 0x1fc   : > { %v2275_v60 = vpack.c.bf16 %v2031_v59, %v2030_v58 }
 0x1fd   : > { %v944_v5 = vsel %vm942_vm3, %v2722_v24, %v2407_v62  ;;  %v945_v13 = vsel %vm942_vm3, %v2722_v24, %v2408_v7  ;;  %v2033_v62 = vld [vmem:[%s3270_s4 + $0x118] sm:$0xff] }
 0x1fe   : > { %v2411_v0 = vpop.permute.xlu1 %2410  ;;  %1051 = vmatmul.mubr.f32.gmra.mrb[2].mxu1 %v960_v63  ;;  %v953_v10 = vsel %vm949_vm4, %v944_v5, %v2403_v6  ;;  %2270 = vmatpush1.bf16.msra.mxu0 %v2269_v53  ;;  %v2009_v63 = vld [vmem:[%s3271_s5] ss:$0 sm:$0xff]  ;;  %v2035_v5 = vld [vmem:[%s3270_s4 + $0x128] sm:$0xff] }
 0x1ff   : > { %v2412_v1 = vunpack.i.l.bf16 %v2411_v0  ;;  %2012 = vmatprep.mubr.msk.f32.mxu1 %vm942_vm3, %v2749_v44  ;;  %v2413_v3 = vunpack.i.h.bf16 %v2411_v0  ;;  %2271 = vmatprep.subr.bf16.mxu0 %v2480_v54  ;;  %v2278_v0 = vpack.c.bf16 %v2033_v62, %v2032_v61 }
 0x201   : > { %v961_v4 = vsel %vm958_vm5, %v952_v2, %v2412_v1  ;;  %v962_v11 = vsel %vm958_vm5, %v953_v10, %v2413_v3 }
 0x202   : > { %v887_v8 = vpop.permute.xlu1 %886  ;;  %1056 = vmatmul.mubr.f32.gmra.mrb[4].mxu1 %v961_v4  ;;  %2273 = vmatpush1.bf16.msra.mxu0 %v2272_v57  ;;  %v2034_v4 = vld [vmem:[%s3270_s4 + $0x120] sm:$0xff] }
 0x203   : > { %2013 = vmatprep.mubr.msk.f32.mxu1 %vm942_vm3, %v2757_v46  ;;  %v946_v17 = vsel %vm942_vm3, %v2720_v23, %v887_v8  ;;  %2274 = vmatprep.subr.bf16.mxu0 %v2480_v54  ;;  %v2281_v6 = vpack.c.bf16 %v2035_v5, %v2034_v4 }
 0x204   : > { %v933_v9 = vpop.permute.xlu0 %932 }
 0x206   : > { %v909_v12 = vpop.permute.xlu1 %908  ;;  %1061 = vmatmul.mubr.f32.gmra.mrb[6].mxu1 %v962_v11  ;;  %2276 = vmatpush1.bf16.msra.mxu0 %v2275_v60 }
 0x207   : > { %v954_v14 = vsel %vm949_vm4, %v945_v13, %v909_v12  ;;  %2014 = vmatprep.mubr.msk.f32.mxu1 %vm942_vm3, %v2757_v46  ;;  %2277 = vmatprep.subr.bf16.mxu0 %v2480_v54  ;;  %v2036_v12 = vld [vmem:[%s3270_s4 + $0x130] sm:$0xff]  ;;  %v2037_v13 = vld [vmem:[%s3270_s4 + $0x138] sm:$0xff] }
 0x208   : > { %v911_v15 = vpop.permute.xlu0 %910  ;;  %v963_v16 = vsel %vm958_vm5, %v954_v14, %v933_v9  ;;  %v2284_v14 = vpack.c.bf16 %v2037_v13, %v2036_v12 }
 0x209   : > { %v955_v18 = vsel %vm949_vm4, %v946_v17, %v911_v15 }
 0x20a   : > { %v935_v19 = vpop.permute.xlu1 %934  ;;  %1066 = vmatmul.mubr.f32.gmra.mrb[8].mxu1 %v963_v16  ;;  %2279 = vmatpush1.bf16.msra.mxu0 %v2278_v0 }
 0x20b   : > { %2015 = vmatprep.mubr.msk.f32.mxu1 %vm942_vm3, %v2757_v46  ;;  %v964_v22 = vsel %vm958_vm5, %v955_v18, %v935_v19  ;;  %2280 = vmatprep.subr.bf16.mxu0 %v2480_v54 }
 0x20c   : > { %v889_v20 = vpop.permute.xlu0 %888 }
 0x20d   : > { %v947_v21 = vsel %vm942_vm3, %v2731_v31, %v889_v20 }
 0x20e   : > { %v913_v25 = vpop.permute.xlu1 %912  ;;  %1071 = vmatmul.mubr.f32.gmra.mrb[10].mxu1 %v964_v22  ;;  %2282 = vmatpush1.bf16.msra.mxu0 %v2281_v6 }
 0x20f   : > { %v956_v26 = vsel %vm949_vm4, %v947_v21, %v913_v25  ;;  %2016 = vmatprep.mubr.msk.f32.mxu1 %vm942_vm3, %v2757_v46  ;;  %2283 = vmatprep.subr.bf16.mxu0 %v2480_v54 }
 0x210   : > { %v891_v27 = vpop.permute.xlu0 %890  ;;  %v965_v28 = vsel %vm958_vm5, %v956_v26, %v935_v19 }
 0x211   : > { %v948_v29 = vsel %vm942_vm3, %v2729_v30, %v891_v27 }
 0x212   : > { %v915_v32 = vpop.permute.xlu1 %914  ;;  %1076 = vmatmul.mubr.f32.gmra.mrb[12].mxu1 %v965_v28  ;;  %2285 = vmatpush1.bf16.msra.mxu0 %v2284_v14 }
 0x213   : > { %v957_v33 = vsel %vm949_vm4, %v948_v29, %v915_v32  ;;  %2017 = vmatprep.mubr.msk.f32.mxu1 %vm942_vm3, %v2757_v46  ;;  %2318 = vmatprep.subr.bf16.mxu0 %v2480_v54 }
 0x214   : > { %v966_v34 = vsel %vm958_vm5, %v957_v33, %v935_v19 }
 0x216   : > { %1081 = vmatmul.mubr.f32.gmra.mrb[14].mxu1 %v966_v34 }
 0x2cd   : > { %v1047_v1 = vpop.f32.mrb[0].mxu1 }
 0x2ce   : > { %v1048_v2 = vadd.f32 %v2009_v63, %v1047_v1  ;;  %v1049_v3 = vpop.f32.mrb[1].mxu1 }
 0x2d0   : > { %v1086_v7 = vmax.f32 %v1048_v2, 0.0 }
 0x2d1   : > { %v1052_v8 = vpop.f32.mrb[2].mxu1 }
 0x2d2   : > { %v2879_v9 = vadd.f32 %v1086_v7, %v2722_v24  ;;  %v1053_v10 = vadd.f32 %v2009_v63, %v1052_v8  ;;  %v1054_v11 = vpop.f32.mrb[3].mxu1 }
 0x2d4   : > { %v1087_v15 = vmax.f32 %v1053_v10, 0.0  ;;  %1131 = vrot.lane.b32.xlu0 %v2879_v9, %s3288_s29 }
 0x2d5   : > { %v1057_v16 = vpop.f32.mrb[4].mxu1 }
 0x2d6   : > { %v2891_v24 = vadd.f32 %v1087_v15, %v2720_v23  ;;  %v1058_v17 = vadd.f32 %v2009_v63, %v1057_v16  ;;  %v1059_v18 = vpop.f32.mrb[5].mxu1 }
 0x2d8   : > { %v2414_v19 = vpack.i.bf16 %v2891_v24, %v2879_v9  ;;  %v1088_v21 = vmax.f32 %v1058_v17, 0.0 }
 0x2d9   : > { %v1062_v20 = vpop.f32.mrb[6].mxu1 }
 0x2da   : > { %v1063_v22 = vadd.f32 %v2009_v63, %v1062_v20  ;;  %v1064_v25 = vpop.f32.mrb[7].mxu1  ;;  %2415 = vrot.lane.b32.xlu1 %v2414_v19, %s3296_s20  ;;  %v2898_v28 = vadd.f32 %v1088_v21, %v2731_v31 }
 0x2dc   : > { %v1089_v26 = vmax.f32 %v1063_v22, 0.0 }
 0x2dd   : > { %v1067_v27 = vpop.f32.mrb[8].mxu1 }
 0x2de   : > { %v2901_v23 = vadd.f32 %v1089_v26, %v2729_v30  ;;  %v1068_v29 = vadd.f32 %v2009_v63, %v1067_v27  ;;  %v1069_v32 = vpop.f32.mrb[9].mxu1  ;;  %v2429_v30 = vpack.i.bf16 %v2898_v28, %v2891_v24 }
 0x2e0   : > { %v1090_v33 = vmax.f32 %v1068_v29, 0.0  ;;  %v2424_v34 = vpack.i.bf16 %v2901_v23, %v2898_v28 }
 0x2e1   : > { %v1072_v35 = vpop.f32.mrb[10].mxu1 }
 0x2e2   : > { %v2906_v36 = vadd.f32 %v1090_v33, %v2741_v39  ;;  %v1073_v37 = vadd.f32 %v2009_v63, %v1072_v35  ;;  %v1074_v40 = vpop.f32.mrb[11].mxu1  ;;  %2425 = vrot.lane.b32.xlu1 %v2424_v34, %s3296_s20  ;;  %2420 = vrot.lane.b32.xlu0 %v2424_v34, %s3297_s21 }
 0x2e4   : > { %v1091_v31 = vmax.f32 %v1073_v37, 0.0  ;;  %2040 = vmatprep.mubr.msk.f32.mxu0 %vm942_vm3, %v2906_v36 }
 0x2e5   : > { %v1077_v41 = vpop.f32.mrb[12].mxu1 }
 0x2e6   : > { %v2915_v42 = vadd.f32 %v1091_v31, %v2739_v38  ;;  %v1078_v43 = vadd.f32 %v2009_v63, %v1077_v41  ;;  %v1079_v39 = vpop.f32.mrb[13].mxu1  ;;  %2430 = vrot.lane.b32.xlu1 %v2429_v30, %s3288_s29 }
 0x2e7   : > { %v1397_v39 = vld [vmem:[%s3272_s6 + $0x88] sm:$0xff] }
 0x2e8   : > { %v1092_v45 = vmax.f32 %v1078_v43, 0.0  ;;  %v2434_v47 = vpack.i.bf16 %v2915_v42, %v2906_v36  ;;  %v1396_v43 = vld [vmem:[%s3272_s6 + $0x80] sm:$0xff] }
 0x2e9   : > { %v1082_v48 = vpop.f32.mrb[14].mxu1 }
 0x2ea   : > { %v2921_v49 = vadd.f32 %v1092_v45, %v2749_v44  ;;  %v1084_v50 = vpop.f32.mrb[15].mxu1  ;;  %2435 = vrot.lane.b32.xlu0 %v2434_v47, %s3297_s21  ;;  %v1083_v51 = vadd.f32 %v2009_v63, %v1082_v48  ;;  %v1380_v45 = vld [vmem:[%s3272_s6] sm:$0xff]  ;;  %v2286_v47 = vpack.c.bf16 %v1397_v39, %v1396_v43  ;;  %v1381_v48 = vld [vmem:[%s3272_s6 + $0x8] sm:$0xff] }
 0x2eb   : > { %v1491_v50 = vld [vmem:[%s3274_s8] sm:$0xff] }
 0x2ec   : > { %1183 = vrot.lane.b32.xlu1 %v2921_v49, %s3297_s21  ;;  %v1093_v38 = vmax.f32 %v1083_v51, 0.0  ;;  %v1492_v51 = vld [vmem:[%s3274_s8 + $0x8] sm:$0xff]  ;;  %2287 = vmatprep.subr.bf16.mxu1 %v2286_v47  ;;  %v1408_v39 = vld [vmem:[%s3272_s6 + $0xe0] sm:$0xff] }
 0x2ee   : > { %1159 = vrot.lane.b32.xlu0 %v2906_v36, %s3296_s20  ;;  %v2933_v44 = vadd.f32 %v1093_v38, %v2757_v46  ;;  %v2288_v38 = vpack.c.bf16 %v1381_v48, %v1380_v45  ;;  %v1409_v45 = vld [vmem:[%s3272_s6 + $0xe8] sm:$0xff]  ;;  %v1495_v48 = vld [vmem:[%s3274_s8 + $0x20] sm:$0xff] }
 0x2ef   : > { %v2310_v47 = vpack.c.bf16 %v1409_v45, %v1408_v39 }
 0x2f0   : > { %1161 = vrot.lane.b32.xlu1 %v2915_v42, %s3296_s20  ;;  %2289 = vmatpush3.bf16.msra.mxu1 %v2288_v38 }
 0x2f2   : > { %1137 = vrot.lane.b32.xlu0 %v2901_v23, %s3288_s29 }
 0x2f4   : > { %1139 = vrot.lane.b32.xlu1 %v2906_v36, %s3288_s29 }
 0x2f6   : > { %1185 = vrot.lane.b32.xlu0 %v2933_v44, %s3297_s21 }
 0x2f8   : > { %1141 = vrot.lane.b32.xlu1 %v2915_v42, %s3288_s29 }
 0x2fa   : > { %1163 = vrot.lane.b32.xlu0 %v2921_v49, %s3296_s20 }
 0x2fe   : > { %1165 = vrot.lane.b32.xlu0 %v2933_v44, %s3296_s20 }
 0x346   : > { %v1132_v53 = vpop.permute.xlu0 %1131 }
 0x347   : > { %v1193_v57 = vsel %vm942_vm3, %v2879_v9, %v1132_v53  ;;  %v1398_v53 = vld [vmem:[%s3272_s6 + $0x90] sm:$0xff] }
 0x34c   : > { %v2416_v52 = vpop.permute.xlu1 %2415 }
 0x34d   : > { %v2417_v55 = vunpack.i.l.bf16 %v2416_v52  ;;  %v2418_v59 = vunpack.i.h.bf16 %v2416_v52  ;;  %v2319_v52 = vpack.c.bf16 %v1492_v51, %v1491_v50  ;;  %v1496_v50 = vld [vmem:[%s3274_s8 + $0x28] sm:$0xff]  ;;  %v1392_v51 = vld [vmem:[%s3272_s6 + $0x60] sm:$0xff] }
 0x34e   : > { %v2325_v38 = vpack.c.bf16 %v1496_v50, %v1495_v48  ;;  %v1587_v48 = vld [vmem:[%s3277_s11 + $0x18] sm:$0xff] }
 0x34f   : > { %v1199_v60 = vsel %vm949_vm4, %v1193_v57, %v2417_v55  ;;  %v1200_v1 = vsel %vm949_vm4, %v1193_v57, %v2418_v59  ;;  %v1399_v55 = vld [vmem:[%s3272_s6 + $0x98] sm:$0xff]  ;;  %v1401_v59 = vld [vmem:[%s3272_s6 + $0xa8] sm:$0xff] }
 0x354   : > { %v2426_v46 = vpop.permute.xlu1 %2425  ;;  %v2421_v56 = vpop.permute.xlu0 %2420 }
 0x355   : > { %v2422_v58 = vunpack.i.l.bf16 %v2421_v56  ;;  %v2423_v61 = vunpack.i.h.bf16 %v2421_v56  ;;  %v2427_v0 = vunpack.i.l.bf16 %v2426_v46  ;;  %v2428_v13 = vunpack.i.h.bf16 %v2426_v46  ;;  %v1382_v46 = vld [vmem:[%s3272_s6 + $0x10] sm:$0xff] }
 0x356   : > { %v2290_v56 = vpack.c.bf16 %v1399_v55, %v1398_v53 }
 0x357   : > { %v1207_v62 = vsel %vm958_vm5, %v1199_v60, %v2422_v58  ;;  %v1208_v3 = vsel %vm958_vm5, %v1200_v1, %v2423_v61  ;;  %v1201_v7 = vsel %vm949_vm4, %v1193_v57, %v2427_v0  ;;  %v1383_v57 = vld [vmem:[%s3272_s6 + $0x18] sm:$0xff]  ;;  %v1400_v58 = vld [vmem:[%s3272_s6 + $0xa0] sm:$0xff]  ;;  %v1402_v0 = vld [vmem:[%s3272_s6 + $0xb0] sm:$0xff] }
 0x358   : > { %v2431_v63 = vpop.permute.xlu1 %2430  ;;  %1294 = vmatmul.mubr.f32.vlgmr.msra.gmra.mrb[8].mxu0 %v1207_v62  ;;  %v2292_v60 = vpack.c.bf16 %v1383_v57, %v1382_v46  ;;  %2291 = vmatprep.subr.bf16.mxu1 %v2290_v56  ;;  %v2294_v61 = vpack.c.bf16 %v1401_v59, %v1400_v58  ;;  %v1384_v62 = vld [vmem:[%s3272_s6 + $0x20] sm:$0xff]  ;;  %v1403_v1 = vld [vmem:[%s3272_s6 + $0xb8] sm:$0xff]  ;;  %v1410_v59 = vld [vmem:[%s3272_s6 + $0xf0] sm:$0xff] }
 0x359   : > { %2041 = vmatprep.mubr.msk.f32.mxu0 %vm942_vm3, %v2915_v42  ;;  %v2432_v2 = vunpack.i.l.bf16 %v2431_v63  ;;  %v2433_v8 = vunpack.i.h.bf16 %v2431_v63  ;;  %2320 = vmatpush3.bf16.msra.mxu0 %v2319_v52  ;;  %v1385_v63 = vld [vmem:[%s3272_s6 + $0x28] sm:$0xff] }
 0x35a   : > { %2321 = vmatprep.subr.bf16.mxu0 %v2480_v54  ;;  %2293 = vmatpush3.bf16.msra.mxu1 %v2292_v60  ;;  %v1393_v52 = vld [vmem:[%s3272_s6 + $0x68] sm:$0xff]  ;;  %v1411_v60 = vld [vmem:[%s3272_s6 + $0xf8] sm:$0xff] }
 0x35b   : > { %v1194_v12 = vsel %vm942_vm3, %v2879_v9, %v2432_v2  ;;  %v1195_v17 = vsel %vm942_vm3, %v2879_v9, %v2433_v8  ;;  %v1493_v2 = vld [vmem:[%s3274_s8 + $0x10] sm:$0xff]  ;;  %2295 = vmatprep.subr.bf16.mxu1 %v2294_v61  ;;  %v1387_v8 = vld [vmem:[%s3272_s6 + $0x38] sm:$0xff]  ;;  %v2312_v56 = vpack.c.bf16 %v1393_v52, %v1392_v51  ;;  %v2314_v61 = vpack.c.bf16 %v1411_v60, %v1410_v59  ;;  %v1588_v51 = vld [vmem:[%s3277_s11 + $0x20] sm:$0xff] }
 0x35c   : > { %v2436_v4 = vpop.permute.xlu0 %2435  ;;  %1299 = vmatmul.mubr.f32.gmra.mrb[10].mxu0 %v1208_v3  ;;  %v1202_v16 = vsel %vm949_vm4, %v1194_v12, %v2428_v13  ;;  %v1494_v3 = vld [vmem:[%s3274_s8 + $0x18] sm:$0xff]  ;;  %v1590_v60 = vld [vmem:[%s3277_s11 + $0x30] sm:$0xff] }
 0x35d   : > { %v2437_v5 = vunpack.i.l.bf16 %v2436_v4  ;;  %2042 = vmatprep.mubr.msk.f32.mxu0 %vm942_vm3, %v2921_v49  ;;  %v2438_v10 = vunpack.i.h.bf16 %v2436_v4  ;;  %v2322_v4 = vpack.c.bf16 %v1494_v3, %v1493_v2 }
 0x35e   : > { %v1184_v6 = vpop.permute.xlu1 %1183 }
 0x35f   : > { %v1209_v11 = vsel %vm958_vm5, %v1201_v7, %v2437_v5  ;;  %v1210_v18 = vsel %vm958_vm5, %v1202_v16, %v2438_v10  ;;  %v2296_v5 = vpack.c.bf16 %v1385_v63, %v1384_v62  ;;  %v1386_v7 = vld [vmem:[%s3272_s6 + $0x30] sm:$0xff]  ;;  %2323 = vmatpush3.bf16.msra.mxu0 %v2322_v4  ;;  %v1404_v10 = vld [vmem:[%s3272_s6 + $0xc0] sm:$0xff]  ;;  %v1395_v63 = vld [vmem:[%s3272_s6 + $0x78] sm:$0xff] }
 0x360   : > { %v1160_v14 = vpop.permute.xlu0 %1159  ;;  %1304 = vmatmul.mubr.f32.gmra.mrb[12].mxu0 %v1209_v11  ;;  %v1405_v11 = vld [vmem:[%s3272_s6 + $0xc8] sm:$0xff]  ;;  %2324 = vmatprep.subr.bf16.mxu0 %v2480_v54  ;;  %v2300_v12 = vpack.c.bf16 %v1387_v8, %v1386_v7  ;;  %v1406_v16 = vld [vmem:[%s3272_s6 + $0xd0] sm:$0xff] }
 0x361   : > { %2043 = vmatprep.mubr.msk.f32.mxu0 %vm942_vm3, %v2933_v44  ;;  %v1203_v19 = vsel %vm949_vm4, %v1195_v17, %v1160_v14  ;;  %2297 = vmatpush3.bf16.msra.mxu1 %v2296_v5  ;;  %v2302_v13 = vpack.c.bf16 %v1405_v11, %v1404_v10  ;;  %v1388_v14 = vld [vmem:[%s3272_s6 + $0x40] sm:$0xff]  ;;  %v1407_v17 = vld [vmem:[%s3272_s6 + $0xd8] sm:$0xff]  ;;  %v1394_v62 = vld [vmem:[%s3272_s6 + $0x70] sm:$0xff]  ;;  %v2485_v10 = vmov 0.0  }
 0x362   : > { %v1162_v15 = vpop.permute.xlu1 %1161  ;;  %v1211_v25 = vsel %vm958_vm5, %v1203_v19, %v1184_v6  ;;  %v2298_v6 = vpack.c.bf16 %v1403_v1, %v1402_v0  ;;  %v2306_v19 = vpack.c.bf16 %v1407_v17, %v1406_v16  ;;  %v2316_v1 = vpack.c.bf16 %v1395_v63, %v1394_v62 }
 0x363   : > { %2326 = vmatpush3.bf16.msra.mxu0 %v2325_v38  ;;  %v1589_v38 = vld [vmem:[%s3277_s11 + $0x28] sm:$0xff] }
 0x364   : > { %v1138_v20 = vpop.permute.xlu0 %1137  ;;  %1309 = vmatmul.mubr.f32.gmra.mrb[14].mxu0 %v1210_v18  ;;  %2299 = vmatprep.subr.bf16.mxu1 %v2298_v6  ;;  %v2334_v52 = vpack.c.bf16 %v1589_v38, %v1588_v51 }
 0x365   : > { %2044 = vmatprep.mubr.msk.f32.mxu0 %vm942_vm3, %v2933_v44  ;;  %v1196_v21 = vsel %vm942_vm3, %v2891_v24, %v1138_v20  ;;  %2301 = vmatpush3.bf16.msra.mxu1 %v2300_v12  ;;  %v3070_v20 = vld [vmem:[%s3271_s5 + $0x1] ss:$0 sm:$0xff] }
 0x366   : > { %v1140_v22 = vpop.permute.xlu1 %1139  ;;  %v1204_v27 = vsel %vm949_vm4, %v1196_v21, %v1162_v15  ;;  %v1389_v15 = vld [vmem:[%s3272_s6 + $0x48] sm:$0xff]  ;;  %2303 = vmatprep.subr.bf16.mxu1 %v2302_v13  ;;  %2339 = vmatprep.subr.bf16.mxu0 %v2480_v54 }
 0x367   : > { %v1197_v32 = vsel %vm942_vm3, %v2898_v28, %v1140_v22  ;;  %v2304_v18 = vpack.c.bf16 %v1389_v15, %v1388_v14 }
 0x368   : > { %v1186_v26 = vpop.permute.xlu0 %1185  ;;  %1314 = vmatmul.mubr.f32.gmra.mrb[16].mxu0 %v1211_v25 }
 0x369   : > { %2045 = vmatprep.mubr.msk.f32.mxu0 %vm942_vm3, %v2933_v44  ;;  %v1212_v29 = vsel %vm958_vm5, %v1204_v27, %v1186_v26  ;;  %2305 = vmatpush3.bf16.msra.mxu1 %v2304_v18 }
 0x36a   : > { %v1142_v34 = vpop.permute.xlu1 %1141  ;;  %2307 = vmatprep.subr.bf16.mxu1 %v2306_v19 }
 0x36b   : > { %v1198_v40 = vsel %vm942_vm3, %v2901_v23, %v1142_v34 }
 0x36c   : > { %v1164_v33 = vpop.permute.xlu0 %1163  ;;  %1319 = vmatmul.mubr.f32.gmra.mrb[18].mxu0 %v1212_v29 }
 0x36d   : > { %v1205_v35 = vsel %vm949_vm4, %v1197_v32, %v1164_v33  ;;  %2046 = vmatprep.mubr.msk.f32.mxu0 %vm942_vm3, %v2933_v44 }
 0x36e   : > { %v1213_v37 = vsel %vm958_vm5, %v1205_v35, %v1186_v26  ;;  %v1390_v35 = vld [vmem:[%s3272_s6 + $0x50] sm:$0xff] }
 0x370   : > { %v1166_v31 = vpop.permute.xlu0 %1165  ;;  %1324 = vmatmul.mubr.f32.gmra.mrb[20].mxu0 %v1213_v37  ;;  %v1391_v37 = vld [vmem:[%s3272_s6 + $0x58] sm:$0xff] }
 0x371   : > { %v1206_v30 = vsel %vm949_vm4, %v1198_v40, %v1166_v31  ;;  %2047 = vmatprep.mubr.msk.f32.mxu0 %vm942_vm3, %v2933_v44  ;;  %v2308_v40 = vpack.c.bf16 %v1391_v37, %v1390_v35  ;;  %v1585_v37 = vld [vmem:[%s3277_s11 + $0x8] sm:$0xff] }
 0x372   : > { %v1214_v41 = vsel %vm958_vm5, %v1206_v30, %v1186_v26 }
 0x373   : > { %2309 = vmatpush3.bf16.msra.mxu1 %v2308_v40 }
 0x374   : > { %1329 = vmatmul.mubr.f32.gmra.mrb[22].mxu0 %v1214_v41  ;;  %2311 = vmatprep.subr.bf16.mxu1 %v2310_v47  ;;  %v1586_v47 = vld [vmem:[%s3277_s11 + $0x10] sm:$0xff] }
 0x375   : > { %2167 = vmatprep.mubr.msk.f32.mxu0 %vm2484_vm6, %v2485_v10  ;;  %v2331_v50 = vpack.c.bf16 %v1587_v48, %v1586_v47 }
 0x377   : > { %2313 = vmatpush3.bf16.msra.mxu1 %v2312_v56  ;;  %v1581_v56 = vld [vmem:[%s3276_s10 + $0x8] sm:$0xff] }
 0x378   : > { %2315 = vmatprep.subr.bf16.mxu1 %v2314_v61  ;;  %v1591_v61 = vld [vmem:[%s3277_s11 + $0x38] sm:$0xff] }
 0x379   : > { %v2337_v62 = vpack.c.bf16 %v1591_v61, %v1590_v60 }
 0x37b   : > { %2317 = vmatpush3.bf16.msra.mxu1 %v2316_v1  ;;  %v1583_v1 = vld [vmem:[%s3276_s10 + $0x18] sm:$0xff] }
 0x37c   : > { %2327 = vmatprep.subr.bf16.mxu1 %v2480_v54 }
 0x42b   : > { %v1295_v21 = vpop.f32.mrb[8].mxu0 }
 0x42c   : > { %v3073_v22 = vadd.f32 %v3070_v20, %v1295_v21  ;;  %v1297_v25 = vpop.f32.mrb[9].mxu0 }
 0x42f   : > { %v1300_v26 = vpop.f32.mrb[10].mxu0 }
 0x430   : > { %v1302_v27 = vpop.f32.mrb[11].mxu0  ;;  %v1301_v31 = vadd.f32 %v3070_v20, %v1300_v26 }
 0x431   : > { %v1334_v27 = vmax.f32 %v3073_v22, 0.0 }
 0x432   : > { %v1335_v53 = vmax.f32 %v1301_v31, 0.0 }
 0x433   : > { %v1305_v29 = vpop.f32.mrb[12].mxu0  ;;  %v1342_v35 = vadd.f32 %v1334_v27, %v2879_v9  ;;  %v1834_v27 = vld [vmem:[%s3281_s15] sm:$0xff] }
 0x434   : > { %v1307_v32 = vpop.f32.mrb[13].mxu0  ;;  %v1306_v55 = vadd.f32 %v3070_v20, %v1305_v29  ;;  %v1343_v2 = vadd.f32 %v1335_v53, %v2891_v24  ;;  %v1490_v24 = vld [vmem:[%s621_s19] sm:$0xff] }
 0x435   : > { %2168 = vmatmul.mubr.msk.f32.vlgmr.msra.gmra.mrb[24].mxu0 %vm1504_vm7, %v1490_v24  ;;  %v2049_v53 = vld [vmem:[%s3275_s9] ss:$0 sm:$0xff] }
 0x436   : > { %v1336_v3 = vmax.f32 %v1306_v55, 0.0  ;;  %2197 = vmatprep.mubr.msk.f32.mxu0 %vm2484_vm6, %v2485_v10 }
 0x437   : > { %v1310_v33 = vpop.f32.mrb[14].mxu0 }
 0x438   : > { %v1312_v34 = vpop.f32.mrb[15].mxu0  ;;  %v1311_v5 = vadd.f32 %v3070_v20, %v1310_v33  ;;  %v1344_v13 = vadd.f32 %v1336_v3, %v2898_v28 }
 0x43a   : > { %v1337_v14 = vmax.f32 %v1311_v5, 0.0  ;;  %v2048_v5 = vld [vmem:[%s3273_s7] ss:$0 sm:$0xff] }
 0x43b   : > { %v1315_v30 = vpop.f32.mrb[16].mxu0 }
 0x43c   : > { %v3083_v41 = vadd.f32 %v3070_v20, %v1315_v30  ;;  %v1317_v43 = vpop.f32.mrb[17].mxu0  ;;  %v1345_v21 = vadd.f32 %v1337_v14, %v2901_v23 }
 0x43f   : > { %v1320_v46 = vpop.f32.mrb[18].mxu0 }
 0x440   : > { %v1321_v57 = vadd.f32 %v3070_v20, %v1320_v46  ;;  %v1322_v58 = vpop.f32.mrb[19].mxu0  ;;  %v1580_v46 = vld [vmem:[%s3276_s10] sm:$0xff] }
 0x441   : > { %v2340_v59 = vpack.c.bf16 %v1581_v56, %v1580_v46 }
 0x442   : > { %v1339_v0 = vmax.f32 %v1321_v57, 0.0 }
 0x443   : > { %v1325_v4 = vpop.f32.mrb[20].mxu0  ;;  %2341 = vmatpush3.bf16.msra.mxu0 %v2340_v59 }
 0x444   : > { %v1347_v6 = vadd.f32 %v1339_v0, %v2915_v42  ;;  %v1326_v7 = vadd.f32 %v3070_v20, %v1325_v4  ;;  %v1327_v8 = vpop.f32.mrb[21].mxu0  ;;  %2342 = vmatprep.subr.bf16.mxu0 %v2480_v54  ;;  %v1582_v0 = vld [vmem:[%s3276_s10 + $0x10] sm:$0xff] }
 0x445   : > { %v2343_v3 = vpack.c.bf16 %v1583_v1, %v1582_v0 }
 0x446   : > { %v1340_v11 = vmax.f32 %v1326_v7, 0.0  ;;  %v2439_v12 = vpack.i.bf16 %v1343_v2, %v1347_v6 }
 0x447   : > { %v1330_v42 = vpop.f32.mrb[22].mxu0  ;;  %2344 = vmatpush3.bf16.msra.mxu0 %v2343_v3 }
 0x448   : > { %v1348_v15 = vadd.f32 %v1340_v11, %v2921_v49  ;;  %v1331_v16 = vadd.f32 %v3070_v20, %v1330_v42  ;;  %v1332_v17 = vpop.f32.mrb[23].mxu0  ;;  %2440 = vrot.lane.b32.xlu1 %v2439_v12, %s3301_s2  ;;  %v1338_v49 = vmax.f32 %v3083_v41, 0.0  ;;  %2345 = vmatprep.subr.bf16.mxu0 %v2480_v54  ;;  %v1748_v42 = vld [vmem:[%s3279_s13] sm:$0xff] }
 0x44a   : > { %v1341_v18 = vmax.f32 %v1331_v16, 0.0  ;;  %v2444_v19 = vpack.i.bf16 %v1344_v13, %v1348_v15  ;;  %v1346_v23 = vadd.f32 %v1338_v49, %v2906_v36  ;;  %v1749_v13 = vld [vmem:[%s3279_s13 + $0x8] sm:$0xff]  ;;  %v1750_v15 = vld [vmem:[%s3279_s13 + $0x10] sm:$0xff] }
 0x44b   : > { %v2346_v14 = vpack.c.bf16 %v1749_v13, %v1748_v42  ;;  %v1835_v49 = vld [vmem:[%s3281_s15 + $0x8] sm:$0xff] }
 0x44c   : > { %v1349_v25 = vadd.f32 %v1341_v18, %v2933_v44  ;;  %2445 = vrot.lane.b32.xlu0 %v2444_v19, %s3296_s20  ;;  %v1584_v44 = vld [vmem:[%s3277_s11] sm:$0xff] }
 0x44d   : > { %v2328_v36 = vpack.c.bf16 %v1585_v37, %v1584_v44  ;;  %v2053_v18 = vld [vmem:[%s3278_s12] ss:$0 sm:$0xff] }
 0x44e   : > { %v2449_v26 = vpack.i.bf16 %v1345_v21, %v1349_v25 }
 0x450   : > { %2450 = vrot.lane.b32.xlu1 %v2449_v26, %s3297_s21 }
 0x4ba   : > { %v2441_v28 = vpop.permute.xlu1 %2440 }
 0x4bb   : > { %v2443_v29 = vunpack.i.h.bf16 %v2441_v28  ;;  %v2442_v32 = vunpack.i.l.bf16 %v2441_v28 }
 0x4bd   : > { %v1374_v40 = vsel %vm942_vm3, %v1342_v35, %v2443_v29  ;;  %v1377_v41 = vsel %vm942_vm3, %v1346_v23, %v2442_v32  ;;  %v1836_v29 = vld [vmem:[%s3281_s15 + $0x10] sm:$0xff]  ;;  %v1837_v32 = vld [vmem:[%s3281_s15 + $0x18] sm:$0xff] }
 0x4be   : > { %v2446_v20 = vpop.permute.xlu0 %2445 }
 0x4bf   : > { %v2448_v33 = vunpack.i.h.bf16 %v2446_v20  ;;  %v2447_v34 = vunpack.i.l.bf16 %v2446_v20  ;;  %v2352_v20 = vpack.c.bf16 %v1835_v49, %v1834_v27 }
 0x4c1   : > { %v1375_v43 = vsel %vm949_vm4, %v1374_v40, %v2448_v33  ;;  %v1378_v9 = vsel %vm949_vm4, %v1377_v41, %v2447_v34  ;;  %v2355_v33 = vpack.c.bf16 %v1837_v32, %v1836_v29  ;;  %v2054_v34 = vld [vmem:[%s3280_s14] ss:$0 sm:$0xff] }
 0x4c2   : > { %v2451_v22 = vpop.permute.xlu1 %2450 }
 0x4c3   : > { %v2453_v31 = vunpack.i.h.bf16 %v2451_v22  ;;  %v2452_v30 = vunpack.i.l.bf16 %v2451_v22 }
 0x4c5   : > { %v1376_v39 = vsel %vm958_vm5, %v1375_v43, %v2453_v31  ;;  %v1379_v45 = vsel %vm958_vm5, %v1378_v9, %v2452_v30 }
 0x4c6   : > { %1483 = vmatprep.mubr.f32.mxu1 %v1379_v45 }
 0x4c7   : > { %1484 = vmatmul.mubr.f32.vlgmr.msra.gmra.mrb[16].mxu1 %v1376_v39 }
 0x4c8   : > { %2329 = vmatpush3.bf16.msra.mxu1 %v2328_v36  ;;  %2186 = vmatprep.mubr.msk.f32.mxu1 %vm2484_vm6, %v2485_v10 }
 0x4c9   : > { %2330 = vmatprep.subr.bf16.mxu1 %v2480_v54 }
 0x4cc   : > { %2332 = vmatpush3.bf16.msra.mxu1 %v2331_v50 }
 0x4cd   : > { %2333 = vmatprep.subr.bf16.mxu1 %v2480_v54 }
 0x4d0   : > { %2335 = vmatpush3.bf16.msra.mxu1 %v2334_v52 }
 0x4d1   : > { %2336 = vmatprep.subr.bf16.mxu1 %v2480_v54 }
 0x4d4   : > { %2338 = vmatpush3.bf16.msra.mxu1 %v2337_v62 }
 0x4d5   : > { %2351 = vmatprep.subr.bf16.mxu1 %v2480_v54 }
 0x508   : > { %v1574_v55 = vpop.f32.mrb[24].mxu0 }
 0x509   : > { %v1575_v57 = vadd.f32 %v2049_v53, %v1574_v55  ;;  %v2169_v58 = vpop.f32.mrb[25].mxu0 }
 0x50b   : > { %v1578_v63 = vmul.f32 0.01, %v1575_v57 }
 0x50d   : > { %v1579_v2 = vmax.f32 %v1575_v57, %v1578_v63 }
 0x50f   : > { %2187 = vmatmul.mubr.msk.f32.vlgmr.msra.gmra.mrb[18].mxu1 %vm949_vm4, %v1579_v2 }
 0x510   : > { %2219 = vmatprep.mubr.msk.f32.mxu1 %vm2484_vm6, %v2485_v10  ;;  %2353 = vmatpush3.bf16.msra.mxu1 %v2352_v20 }
 0x511   : > { %2354 = vmatprep.subr.bf16.mxu1 %v2480_v54 }
 0x514   : > { %2356 = vmatpush3.bf16.msra.mxu1 %v2355_v33 }
 0x59a   : > { %v2103_v4 = vpop.f32.mrb[16].mxu1 }
 0x59b   : > { %v2104_v6 = vpop.f32.mrb[17].mxu1 }
 0x59c   : > { %v2105_v7 = vadd.f32 %v2104_v6, %v2103_v4 }
 0x59e   : > { %v1486_v8 = vadd.f32 %v2105_v7, %v2048_v5 }
 0x5a0   : > { %v1489_v24 = vmax.f32 %v1486_v8, 0.0 }
 0x5a2   : > { %2198 = vmatmul.mubr.msk.f32.vlgmr.msra.gmra.mrb[26].mxu0 %vm942_vm3, %v1489_v24 }
 0x5a3   : > { %2208 = vmatprep.mubr.msk.f32.mxu0 %vm2484_vm6, %v2485_v10  ;;  %2347 = vmatpush3.bf16.msra.mxu0 %v2346_v14  ;;  %v1751_v10 = vld [vmem:[%s3279_s13 + $0x18] sm:$0xff] }
 0x5a4   : > { %2348 = vmatprep.subr.bf16.mxu0 %v2480_v54  ;;  %v2349_v16 = vpack.c.bf16 %v1751_v10, %v1750_v15  ;;  %v2056_v54 = vld [vmem:[%s3282_s16] ss:$0 sm:$0xff] }
 0x5a7   : > { %2350 = vmatpush3.bf16.msra.mxu0 %v2349_v16 }
 0x5e2   : > { %v1661_v11 = vpop.f32.mrb[18].mxu1 }
 0x5e3   : > { %v2188_v12 = vpop.f32.mrb[19].mxu1 }
 0x675   : > { %v1734_v17 = vpop.f32.mrb[26].mxu0 }
 0x676   : > { %v1735_v19 = vadd.f32 %v1734_v17, %v1661_v11  ;;  %v2199_v21 = vpop.f32.mrb[27].mxu0 }
 0x678   : > { %v1745_v25 = vadd.f32 %v2053_v18, %v1735_v19 }
 0x67a   : > { %v1746_v26 = vmul.f32 0.01, %v1745_v25 }
 0x67c   : > { %v1747_v28 = vmax.f32 %v1745_v25, %v1746_v26 }
 0x67e   : > { %2209 = vmatmul.mubr.msk.f32.vlgmr.msra.gmra.mrb[28].mxu0 %vm942_vm3, %v1747_v28 }
 0x751   : > { %v1828_v35 = vpop.f32.mrb[28].mxu0 }
 0x752   : > { %v1829_v23 = vadd.f32 %v2054_v34, %v1828_v35  ;;  %v2210_v44 = vpop.f32.mrb[29].mxu0 }
 0x754   : > { %v1832_v37 = vmul.f32 0.01, %v1829_v23 }
 0x756   : > { %v1833_v22 = vmax.f32 %v1829_v23, %v1832_v37 }
 0x758   : > { %2220 = vmatmul.mubr.msk.f32.vlgmr.msra.gmra.mrb[20].mxu1 %vm942_vm3, %v1833_v22 }
 0x82b   : > { %v1914_v40 = vpop.f32.mrb[20].mxu1 }
 0x82c   : > { %v1915_v31 = vadd.f32 %v2056_v54, %v1914_v40  ;;  %v2221_v30 = vpop.f32.mrb[21].mxu1 }
 0x82e   : > { %1918 = vst.msk [vmem:[%s625_s22] sm:$0xff] %vm691_vm0, %v1915_v31 }
 0x82f PF: > { %p24_p9 = scmp.ge.s32.totalorder %s2593_s28, 4   ;;  %s3302_s24 = smov %s2472_s25 }
 0x830   : > { %s3303_s25 = smov %s2602_s30  ;;  %s3304_s26 = smov %s2593_s28 }
 0x831   :  { %26 = sbr.rel (!%p24_p9) target bundleno = 7 (0x7), region = 166 }

</bundles_post_ra>
